<compile_context>
chip_gen: v7x
topology: tpu7x:2x2x1
jax: 0.10.0
libtpu: 0.0.40
codegen_flags: <defaults>
</compile_context>

<pallas_src>
import math
from functools import partial

import jax
import jax.numpy as jnp
from jax import lax
from jax.experimental import pallas as pl
from jax.experimental.pallas import tpu as pltpu


def _attention_kernel(x_ref, wq_ref, wk_ref, wv_ref, wo_ref, bo_ref,
                      o_ref, acc_ref, *, scale):
    # x_ref:  (1, N, C)   channels-last spatial tokens for this batch element
    # w*_ref: (1, C, dh)  per-head slices of the 1x1-conv weights
    # bo_ref: (C, 1)      output-conv bias
    # o_ref:  (1, C, N)   channel-first output (lane-dense along N)
    # acc_ref:(C, N) f32  accumulator over heads
    h = pl.program_id(1)

    x = x_ref[0]            # (N, C)
    wq = wq_ref[0]          # (C, dh)
    wk = wk_ref[0]
    wv = wv_ref[0]
    wo = wo_ref[0]          # (C, dh)  output-conv weights for this head

    q = jnp.dot(x, wq, preferred_element_type=jnp.float32) * scale   # (N, dh)
    k = jnp.dot(x, wk, preferred_element_type=jnp.float32)           # (N, dh)
    v = jnp.dot(x, wv, preferred_element_type=jnp.float32)           # (N, dh)

    # sim[i, j] = sum_d q[i, d] * k[j, d]   (q @ k^T)
    sim = lax.dot_general(q, k, (((1,), (1,)), ((), ())),
                          preferred_element_type=jnp.float32)        # (N, N)
    sim = sim - jnp.max(sim, axis=-1, keepdims=True)                 # stable softmax
    p = jnp.exp(sim)
    attn = p / jnp.sum(p, axis=-1, keepdims=True)

    out_h = jnp.dot(attn, v, preferred_element_type=jnp.float32)     # (N, dh)

    # Head's contribution to the 1x1 output conv, channel-first (lane-dense):
    # contrib[c, n] = sum_d wo[c, d] * out_h[n, d]
    contrib = lax.dot_general(wo, out_h, (((1,), (1,)), ((), ())),
                              preferred_element_type=jnp.float32)    # (C, N)

    @pl.when(h == 0)
    def _init():
        acc_ref[...] = jnp.zeros_like(acc_ref)

    acc_ref[...] += contrib

    @pl.when(h == pl.num_programs(1) - 1)
    def _finalize():
        o_ref[0] = acc_ref[...] + bo_ref[...]    # bias (C,1) broadcasts along N


def attention_forward(x, wq3, wk3, wv3, wo3, bo, *, heads, dim_head):
    """x: (B, C, H, W) f32.  wq3/wk3/wv3/wo3: (heads, C, dim_head).  bo: (C,).

    Returns (B, C, H, W) f32 — same semantics as Attention.forward.
    """
    B, C, H, W = x.shape
    N = H * W
    scale = dim_head ** (-0.5)

    # Layout plumbing in the wrapper: tokens channels-last for the in-kernel
    # matmuls; bias as a (C, 1) column for lane broadcast.
    x_nc = jnp.transpose(x.reshape(B, C, N), (0, 2, 1)).astype(jnp.float32)   # (B, N, C)
    bo2 = bo.reshape(C, 1).astype(jnp.float32)

    kernel = partial(_attention_kernel, scale=scale)

    out_cn = pl.pallas_call(
        kernel,
        out_shape=jax.ShapeDtypeStruct((B, C, N), jnp.float32),
        grid_spec=pltpu.PrefetchScalarGridSpec(
            num_scalar_prefetch=0,
            grid=(B, heads),
            in_specs=[
                pl.BlockSpec((1, N, C), lambda b, h: (b, 0, 0)),          # x (resident across heads)
                pl.BlockSpec((1, C, dim_head), lambda b, h: (h, 0, 0)),   # Wq head slice
                pl.BlockSpec((1, C, dim_head), lambda b, h: (h, 0, 0)),   # Wk head slice
                pl.BlockSpec((1, C, dim_head), lambda b, h: (h, 0, 0)),   # Wv head slice
                pl.BlockSpec((1, C, dim_head), lambda b, h: (h, 0, 0)),   # Wout head slice
                pl.BlockSpec((C, 1), lambda b, h: (0, 0)),                # bias
            ],
            out_specs=pl.BlockSpec((1, C, N), lambda b, h: (b, 0, 0)),
            scratch_shapes=[pltpu.VMEM((C, N), jnp.float32)],
        ),
        compiler_params=pltpu.CompilerParams(
            dimension_semantics=("parallel", "arbitrary")),
    )(x_nc, wq3, wk3, wv3, wo3, bo2)

    return out_cn.reshape(B, C, H, W)


def _reference(x, wq3, wk3, wv3, wo3, bo, scale):
    """Pure-JAX mirror of the PyTorch Attention.forward math."""
    B, C, H, W = x.shape
    N = H * W
    hi = lax.Precision.HIGHEST
    xf = x.reshape(B, C, N)                                              # (B, C, N)
    q = jnp.einsum('bcn,hcd->bhdn', xf, wq3, precision=hi) * scale       # (B, h, d, N)
    k = jnp.einsum('bcn,hcd->bhdn', xf, wk3, precision=hi)
    v = jnp.einsum('bcn,hcd->bhdn', xf, wv3, precision=hi)
    sim = jnp.einsum('bhdi,bhdj->bhij', q, k, precision=hi)              # (B, h, N, N)
    sim = sim - jnp.max(sim, axis=-1, keepdims=True)
    attn = jax.nn.softmax(sim, axis=-1)
    out = jnp.einsum('bhij,bhdj->bhid', attn, v, precision=hi)           # (B, h, N, d)
    y = jnp.einsum('bhid,hcd->bci', out, wo3, precision=hi) + bo[None, :, None]
    return y.reshape(B, C, H, W)


if __name__ == "__main__":
    key = jax.random.PRNGKey(0)
    B, C, H, W = 2, 4, 16, 16
    heads, dim_head = 4, 32
    hidden_dim = heads * dim_head

    k0, k1, k2, k3, k4, k5 = jax.random.split(key, 6)
    x = jax.random.normal(k0, (B, C, H, W), dtype=jnp.float32)
    w_in = 1.0 / math.sqrt(C)
    wq3 = jax.random.normal(k1, (heads, C, dim_head), jnp.float32) * w_in
    wk3 = jax.random.normal(k2, (heads, C, dim_head), jnp.float32) * w_in
    wv3 = jax.random.normal(k3, (heads, C, dim_head), jnp.float32) * w_in
    wo3 = jax.random.normal(k4, (heads, C, dim_head), jnp.float32) * (1.0 / math.sqrt(hidden_dim))
    bo = jax.random.normal(k5, (C,), jnp.float32) * 0.1

    out = attention_forward(x, wq3, wk3, wv3, wo3, bo, heads=heads, dim_head=dim_head)
    out = jax.block_until_ready(out)

    ref = _reference(x, wq3, wk3, wv3, wo3, bo, scale=dim_head ** (-0.5))
    assert out.shape == (B, C, H, W), out.shape
    max_err = float(jnp.max(jnp.abs(out - ref)))
    assert jnp.allclose(out, ref, atol=5e-3, rtol=5e-3), f"mismatch vs reference, max|diff|={max_err}"

    print("KERNEL_OK")
</pallas_src>

<mosaic_0001>
module attributes {stable_mosaic.version = 11 : i64} {
  func.func @_attention_kernel(%arg0: i32, %arg1: i32, %arg2: memref<1x256x4xf32, #tpu.memory_space<vmem>>, %arg3: memref<1x4x32xf32, #tpu.memory_space<vmem>>, %arg4: memref<1x4x32xf32, #tpu.memory_space<vmem>>, %arg5: memref<1x4x32xf32, #tpu.memory_space<vmem>>, %arg6: memref<1x4x32xf32, #tpu.memory_space<vmem>>, %arg7: memref<4x1xf32, #tpu.memory_space<vmem>>, %arg8: memref<1x4x256xf32, #tpu.memory_space<vmem>>, %arg9: memref<4x256xf32, #tpu.memory_space<vmem>>) attributes {dimension_semantics = [#tpu.dimension_semantics<parallel>, #tpu.dimension_semantics<arbitrary>], iteration_bounds = array<i64: 2, 4>, scalar_prefetch = 0 : i64, scratch_operands = 1 : i64, tpu.core_type = #tpu.core_type<tc>, window_params = [{transform_indices = @transform_0, window_bounds = array<i64: 1, 256, 4>}, {transform_indices = @transform_1, window_bounds = array<i64: 1, 4, 32>}, {transform_indices = @transform_2, window_bounds = array<i64: 1, 4, 32>}, {transform_indices = @transform_3, window_bounds = array<i64: 1, 4, 32>}, {transform_indices = @transform_4, window_bounds = array<i64: 1, 4, 32>}, {pipeline_mode = #tpu.pipeline_mode<synchronous>, transform_indices = @transform_5, window_bounds = array<i64: 4, 1>}, {transform_indices = @transform_6, window_bounds = array<i64: 1, 4, 256>}]} {
    %c0 = arith.constant 0 : index
    %c0_0 = arith.constant 0 : index
    %c0_1 = arith.constant 0 : index
    %0 = vector.load %arg2[%c0, %c0_0, %c0_1] : memref<1x256x4xf32, #tpu.memory_space<vmem>>, vector<1x256x4xf32>
    %1 = vector.shape_cast %0 : vector<1x256x4xf32> to vector<256x4xf32>
    %c0_2 = arith.constant 0 : index
    %c0_3 = arith.constant 0 : index
    %c0_4 = arith.constant 0 : index
    %2 = vector.load %arg3[%c0_2, %c0_3, %c0_4] : memref<1x4x32xf32, #tpu.memory_space<vmem>>, vector<1x4x32xf32>
    %3 = vector.shape_cast %2 : vector<1x4x32xf32> to vector<4x32xf32>
    %c0_5 = arith.constant 0 : index
    %c0_6 = arith.constant 0 : index
    %c0_7 = arith.constant 0 : index
    %4 = vector.load %arg4[%c0_5, %c0_6, %c0_7] : memref<1x4x32xf32, #tpu.memory_space<vmem>>, vector<1x4x32xf32>
    %5 = vector.shape_cast %4 : vector<1x4x32xf32> to vector<4x32xf32>
    %c0_8 = arith.constant 0 : index
    %c0_9 = arith.constant 0 : index
    %c0_10 = arith.constant 0 : index
    %6 = vector.load %arg5[%c0_8, %c0_9, %c0_10] : memref<1x4x32xf32, #tpu.memory_space<vmem>>, vector<1x4x32xf32>
    %7 = vector.shape_cast %6 : vector<1x4x32xf32> to vector<4x32xf32>
    %c0_11 = arith.constant 0 : index
    %c0_12 = arith.constant 0 : index
    %c0_13 = arith.constant 0 : index
    %8 = vector.load %arg6[%c0_11, %c0_12, %c0_13] : memref<1x4x32xf32, #tpu.memory_space<vmem>>, vector<1x4x32xf32>
    %9 = vector.shape_cast %8 : vector<1x4x32xf32> to vector<4x32xf32>
    %cst = arith.constant dense<0.000000e+00> : vector<256x32xf32>
    %10 = tpu.matmul %1, %3, %cst {dimension_numbers = #tpu.dot_dimension_numbers<[1], [0], [0], [1], [0, 0, 1, 1], [], []>} : vector<256x4xf32>, vector<4x32xf32>, vector<256x32xf32> -> vector<256x32xf32>
    %cst_14 = arith.constant 0.176776692 : f32
    %11 = vector.broadcast %cst_14 : f32 to vector<256x32xf32>
    %12 = arith.mulf %10, %11 : vector<256x32xf32>
    %cst_15 = arith.constant dense<0.000000e+00> : vector<256x32xf32>
    %13 = tpu.matmul %1, %5, %cst_15 {dimension_numbers = #tpu.dot_dimension_numbers<[1], [0], [0], [1], [0, 0, 1, 1], [], []>} : vector<256x4xf32>, vector<4x32xf32>, vector<256x32xf32> -> vector<256x32xf32>
    %cst_16 = arith.constant dense<0.000000e+00> : vector<256x32xf32>
    %14 = tpu.matmul %1, %7, %cst_16 {dimension_numbers = #tpu.dot_dimension_numbers<[1], [0], [0], [1], [0, 0, 1, 1], [], []>} : vector<256x4xf32>, vector<4x32xf32>, vector<256x32xf32> -> vector<256x32xf32>
    %cst_17 = arith.constant dense<0.000000e+00> : vector<256x256xf32>
    %15 = tpu.matmul %12, %13, %cst_17 {dimension_numbers = #tpu.dot_dimension_numbers<[1], [1], [0], [0], [0, 0, 1, 0], [], []>} : vector<256x32xf32>, vector<256x32xf32>, vector<256x256xf32> -> vector<256x256xf32>
    %cst_18 = arith.constant dense<0xFF800000> : vector<256xf32>
    %16 = vector.multi_reduction <maximumf>, %15, %cst_18 [1] : vector<256x256xf32> to vector<256xf32>
    %17 = vector.shape_cast %16 : vector<256xf32> to vector<256x1xf32>
    %18 = vector.broadcast %17 : vector<256x1xf32> to vector<256x256xf32>
    %19 = arith.subf %15, %18 : vector<256x256xf32>
    %20 = math.exp %19 : vector<256x256xf32>
    %cst_19 = arith.constant dense<0.000000e+00> : vector<256xf32>
    %21 = vector.multi_reduction <add>, %20, %cst_19 [1] : vector<256x256xf32> to vector<256xf32>
    %22 = vector.shape_cast %21 : vector<256xf32> to vector<256x1xf32>
    %23 = vector.broadcast %22 : vector<256x1xf32> to vector<256x256xf32>
    %24 = arith.divf %20, %23 : vector<256x256xf32>
    %cst_20 = arith.constant dense<0.000000e+00> : vector<256x32xf32>
    %25 = tpu.matmul %24, %14, %cst_20 {dimension_numbers = #tpu.dot_dimension_numbers<[1], [0], [0], [1], [0, 0, 1, 1], [], []>} : vector<256x256xf32>, vector<256x32xf32>, vector<256x32xf32> -> vector<256x32xf32>
    %cst_21 = arith.constant dense<0.000000e+00> : vector<4x256xf32>
    %26 = tpu.matmul %9, %25, %cst_21 {dimension_numbers = #tpu.dot_dimension_numbers<[1], [1], [0], [0], [0, 0, 1, 0], [], []>} : vector<4x32xf32>, vector<256x32xf32>, vector<4x256xf32> -> vector<4x256xf32>
    %c0_i32 = arith.constant 0 : i32
    %27 = arith.cmpi eq, %arg1, %c0_i32 : i32
    %28 = arith.extui %27 : i1 to i32
    %c0_i32_22 = arith.constant 0 : i32
    %29 = arith.cmpi ne, %28, %c0_i32_22 : i32
    scf.if %29 {
      %cst_28 = arith.constant 0.000000e+00 : f32
      %36 = vector.broadcast %cst_28 : f32 to vector<4x256xf32>
      %c0_29 = arith.constant 0 : index
      %c0_30 = arith.constant 0 : index
      %37 = vector.load %arg9[%c0_29, %c0_30] : memref<4x256xf32, #tpu.memory_space<vmem>>, vector<4x256xf32>
      tpu.vector_store %arg9[%c0_29, %c0_30], %36 {strides = array<i32>} : memref<4x256xf32, #tpu.memory_space<vmem>>, vector<4x256xf32>,
    } else {
    }
    %c0_23 = arith.constant 0 : index
    %c0_24 = arith.constant 0 : index
    %30 = vector.load %arg9[%c0_23, %c0_24] : memref<4x256xf32, #tpu.memory_space<vmem>>, vector<4x256xf32>
    %31 = arith.addf %30, %26 : vector<4x256xf32>
    %c0_25 = arith.constant 0 : index
    %c0_26 = arith.constant 0 : index
    %32 = vector.load %arg9[%c0_25, %c0_26] : memref<4x256xf32, #tpu.memory_space<vmem>>, vector<4x256xf32>
    tpu.vector_store %arg9[%c0_25, %c0_26], %31 {strides = array<i32>} : memref<4x256xf32, #tpu.memory_space<vmem>>, vector<4x256xf32>,
    %c3_i32 = arith.constant 3 : i32
    %33 = arith.cmpi eq, %arg1, %c3_i32 : i32
    %34 = arith.extui %33 : i1 to i32
    %c0_i32_27 = arith.constant 0 : i32
    %35 = arith.cmpi ne, %34, %c0_i32_27 : i32
    scf.if %35 {
      %c0_28 = arith.constant 0 : index
      %c0_29 = arith.constant 0 : index
      %36 = vector.load %arg9[%c0_28, %c0_29] : memref<4x256xf32, #tpu.memory_space<vmem>>, vector<4x256xf32>
      %c0_30 = arith.constant 0 : index
      %c0_31 = arith.constant 0 : index
      %37 = vector.load %arg7[%c0_30, %c0_31] : memref<4x1xf32, #tpu.memory_space<vmem>>, vector<4x1xf32>
      %38 = vector.broadcast %37 : vector<4x1xf32> to vector<4x256xf32>
      %39 = arith.addf %36, %38 : vector<4x256xf32>
      %c0_32 = arith.constant 0 : index
      %c0_33 = arith.constant 0 : index
      %c0_34 = arith.constant 0 : index
      %40 = vector.load %arg8[%c0_32, %c0_33, %c0_34] : memref<1x4x256xf32, #tpu.memory_space<vmem>>, vector<1x4x256xf32>
      %41 = vector.shape_cast %40 : vector<1x4x256xf32> to vector<4x256xf32>
      %42 = vector.shape_cast %39 : vector<4x256xf32> to vector<1x4x256xf32>
      tpu.vector_store %arg8[%c0_32, %c0_33, %c0_34], %42 {strides = array<i32>} : memref<1x4x256xf32, #tpu.memory_space<vmem>>, vector<1x4x256xf32>,
    } else {
    }
    return
  }
  func.func @transform_0(%arg0: i32, %arg1: i32) -> (i32, i32, i32) {
    %c0_i32 = arith.constant 0 : i32
    %c0_i32_0 = arith.constant 0 : i32
    %c0_i32_1 = arith.constant 0 : i32
    return %arg0, %c0_i32, %c0_i32_0 : i32, i32, i32
  }
  func.func @transform_1(%arg0: i32, %arg1: i32) -> (i32, i32, i32) {
    %c0_i32 = arith.constant 0 : i32
    %c0_i32_0 = arith.constant 0 : i32
    %c0_i32_1 = arith.constant 0 : i32
    return %arg1, %c0_i32, %c0_i32_0 : i32, i32, i32
  }
  func.func @transform_2(%arg0: i32, %arg1: i32) -> (i32, i32, i32) {
    %c0_i32 = arith.constant 0 : i32
    %c0_i32_0 = arith.constant 0 : i32
    %c0_i32_1 = arith.constant 0 : i32
    return %arg1, %c0_i32, %c0_i32_0 : i32, i32, i32
  }
  func.func @transform_3(%arg0: i32, %arg1: i32) -> (i32, i32, i32) {
    %c0_i32 = arith.constant 0 : i32
    %c0_i32_0 = arith.constant 0 : i32
    %c0_i32_1 = arith.constant 0 : i32
    return %arg1, %c0_i32, %c0_i32_0 : i32, i32, i32
  }
  func.func @transform_4(%arg0: i32, %arg1: i32) -> (i32, i32, i32) {
    %c0_i32 = arith.constant 0 : i32
    %c0_i32_0 = arith.constant 0 : i32
    %c0_i32_1 = arith.constant 0 : i32
    return %arg1, %c0_i32, %c0_i32_0 : i32, i32, i32
  }
  func.func @transform_5(%arg0: i32, %arg1: i32) -> (i32, i32) {
    %c0_i32 = arith.constant 0 : i32
    %c0_i32_0 = arith.constant 0 : i32
    %c0_i32_1 = arith.constant 0 : i32
    return %c0_i32, %c0_i32_0 : i32, i32
  }
  func.func @transform_6(%arg0: i32, %arg1: i32) -> (i32, i32, i32) {
    %c0_i32 = arith.constant 0 : i32
    %c0_i32_0 = arith.constant 0 : i32
    %c0_i32_1 = arith.constant 0 : i32
    return %arg0, %c0_i32, %c0_i32_0 : i32, i32, i32
  }
}

</mosaic_0001>

<bundles_post_ra>
// kernel: tpu_custom_call.1
= control target key start
LH: loop header
LB: loop body
LE: loop exit
PB: predicated region body
PF: predicated region fallthrough
CT: control target
= control target key end

     0   :  { %11 = vsyncpa [#allocation4], 0  ;;  %s5041_s0 = inlined_call_operand.vmem [shape: f32[2,256,4], index: 0, kind: input, shape index: {}]   ;;  %s5042_s1 = inlined_call_operand.vmem [shape: f32[4,4,32], index: 1, kind: input, shape index: {}]   ;;  %s5043_s2 = inlined_call_operand.vmem [shape: f32[4,4,32], index: 2, kind: input, shape index: {}]   ;;  %s5044_s3 = inlined_call_operand.vmem [shape: f32[4,4,32], index: 3, kind: input, shape index: {}]   ;;  %s5045_s4 = inlined_call_operand.vmem [shape: f32[4,4,32], index: 4, kind: input, shape index: {}]   ;;  %s5046_s5 = inlined_call_operand.vmem [shape: f32[4,1], index: 5, kind: input, shape index: {}]   ;;  %s5047_s6 = inlined_call_operand.hbm [shape: f32[2,4,256], index: 6, kind: output, shape index: {}]  }
   0x1   :  { %13 = vsyncpa [#allocation4 + $0x1], 0  ;;  %s3816_s21 = smov 0   ;;  %s3818_s22 = smov 0  }
   0x2   :  { %s3820_s23 = smov 0   ;;  %s3822_s24 = smov 0  }
   0x3   :  { %s3824_s25 = smov 0   ;;  %s3826_s26 = smov 0  }
   0x4   :  { %s3828_s27 = smov 0   ;;  %s3830_s28 = smov 0  }
   0x5 LB: > { %s2670_s29 = sadd.s32 4294967295, %s3774_s28   ;;  %s2671_s30 = sadd.s32 4294967294, %s3774_s28   ;;  %s3774_s28 = sphi %s3830_s28, %s19_s28   ;;  %s3770_s27 = sphi %s3828_s27, %s5209_s27   ;;  %s3766_s26 = sphi %s3826_s26, %s5208_s26   ;;  %s3762_s25 = sphi %s3824_s25, %s5207_s25   ;;  %s3758_s24 = sphi %s3822_s24, %s5206_s24   ;;  %s3754_s23 = sphi %s3820_s23, %s5205_s23   ;;  %s3750_s22 = sphi %s3818_s22, %s5204_s22   ;;  %s3746_s21 = sphi %s3816_s21, %s5203_s21  }
   0x6   : > { %s28_s7 = sadd.s32 1, %s3766_s26  ;;  %s31_s8 = sadd.s32 1, %s3770_s27 }
   0x7   : > { %p29_p0 = scmp.ge.s32.totalorder %s28_s7, 4  ;;  %p199_p1 = scmp.ne.s32.totalorder %s3754_s23, %s3750_s22 }
   0x8   : > { %p200_p2 = scmp.eq.s32.totalorder %s2670_s29, 7  ;;  %p205_p4 = scmp.ne.s32.totalorder %s3750_s22, %s3746_s21 }
   0x9   : > { %s5211_s7 = smov (%p29_p0, %s28_s7), 0  ;;  %s5213_s8 = smov (!%p29_p0, %s31_s8), %s3770_s27 }
   0xa   : > { %p3865_p3 = por %p200_p2, %p199_p1  ;;  %p33_p5 = scmp.ge.s32.totalorder %s5213_s8, 2 }
   0xb   : > { %p206_p6 = scmp.eq.s32.totalorder %s2671_s30, 7  ;;  %p2674_p7 = scmp.ge.s32.totalorder %s3774_s28, 1 }
   0xc   : > { %p263_p8 = scmp.lt.s32.totalorder %s3774_s28, 9  ;;  %s5215_s8 = smov (%p33_p5, %s5213_s8), 0 }
   0xd   : > { %5100 = sst [smem:[#allocation6_spill]] %s5215_s8  ;;  %p3875_p9 = por %p206_p6, %p205_p4 }
   0xe   : > { %p264_p10 = pnand %p2674_p7, %p263_p8  ;;  %s186_s11 = ssub.s32 %s3770_s27, %s5215_s8 }
   0xf   : > { %s189_s12 = sadd.s32 1, %s3754_s23  ;;  %p187_p11 = scmp.eq.s32.totalorder %s186_s11, 0 }
  0x10   : > { %267 = sbr.rel (%p264_p10) target bundleno = 1621 (0x655), region = 44 }
  0x11   : > { %s3883_s13 = scalar_select %p187_p11, %s3754_s23, %s189_s12  }
  0x17   : > { %p314_p12 = scmp.lt.s32.totalorder %s3758_s24, 3  ;;  %p309_p13 = scmp.lt.s32.totalorder %s3762_s25, 1  ;;  %vm463_vm0 = vcmask 1043456   ;;  %vm366_vm1 = vcmask 31744   ;;  %vm1180_vm2 = vcmask 261120  }
  0x18   : > { %s306_s14 = sand.u32 1, %s3750_s22   ;;  %vm4209_vm3 = vmpackc.low %vm1180_vm2, %vm1180_vm2  ;;  %p2878_p0 = scmp.ne.s32.totalorder %s3758_s24, 0 }
  0x19   : > { %s315_s15 = scalar_select %p314_p12, %s3758_s24, 3 }
  0x1a   : > { %s310_s16 = scalar_select %p309_p13, %s3762_s25, 1 }
  0x1b   : > { %s3890_s17 = sshll.u32 %s315_s15, 2  ;;  %s3894_s18 = sshll.u32 %s306_s14, 3 }
  0x1c   : > { %s317_s29 = scalar_lea.vmem %s5042_s1, %s3890_s17  ;;  %s2885_s30 = sshll.u32 %s310_s16, 8 }
  0x1d   : > { %v362_v0 = vld [vmem:[%s317_s29] sm:$0xf]  ;;  %s3903_s8 = scalar_lea.vmem %s5041_s0, %s2885_s30  ;;  %s321_s19 = scalar_lea.vmem %s5043_s2, %s3890_s17 }
  0x1e   : > { %3410 = vmatprep.subr.msk.mxu1 %vm463_vm0, %v362_v0  ;;  %v3907_v1 = vld [vmem:[%s3903_s8 + $0x90] sm:$0xff]  ;;  %v3910_v2 = vld [vmem:[%s3903_s8 + $0x98] sm:$0xff]  ;;  %v3913_v3 = vld [vmem:[%s3903_s8 + $0xa0] sm:$0xff]  ;;  %3116 = vmatprep.subr.msk.mxu0 %vm463_vm0, %v362_v0  ;;  %s325_s29 = scalar_lea.vmem %s5044_s3, %s3890_s17  ;;  %s329_s12 = scalar_lea.vmem %s5045_s4, %s3890_s17 }
  0x1f   : > { %5102 = vst [vmem:[#allocation7_spill] sm:$0xff] %v3907_v1  ;;  %5103 = vst [vmem:[#allocation8_spill] sm:$0xff] %v3910_v2  ;;  %3411 = vmatpush3.msk.msra.mxu1 %vm463_vm0, %v362_v0  ;;  %3145 = vmatprep.mubr.msk.f32.mxu1 %vm366_vm1, %v3907_v1  ;;  %v3929_v4 = vld [vmem:[%s3903_s8 + $0xa8] sm:$0xff]  ;;  %v3932_v5 = vld [vmem:[%s3903_s8 + $0xb0] sm:$0xff]  ;;  %s308_s17 = scalar_lea.vmem [#allocation3], %s3894_s18 }
  0x20   : > { %5104 = vst [vmem:[#allocation9_spill] sm:$0xff] %v3913_v3  ;;  %3146 = vmatmul.mubr.msk.f32.vlgmr.msra.gmra.mrb[0].mxu1 %vm366_vm1, %v3910_v2  ;;  %3117 = vmatpush3.msk.msra.mxu0 %vm463_vm0, %v362_v0  ;;  %5105 = vst [vmem:[#allocation10_spill] sm:$0xff] %v3929_v4  ;;  %v363_v6 = vld [vmem:[%s321_s19] sm:$0xf]  ;;  %v3945_v8 = vld [vmem:[%s3903_s8 + $0xb8] sm:$0xff] }
  0x21   : > { %3148 = vmatprep.mubr.msk.f32.mxu1 %vm366_vm1, %v3913_v3  ;;  %5106 = vst [vmem:[#allocation11_spill] sm:$0xff] %v3932_v5  ;;  %3166 = vmatprep.subr.msk.mxu1 %vm463_vm0, %v363_v6  ;;  %v3936_v7 = vld [vmem:[%s3903_s8] sm:$0xff]  ;;  %5107 = vst [vmem:[#allocation12_spill] sm:$0xff] %v3945_v8  ;;  %v3949_v9 = vld [vmem:[%s3903_s8 + $0x8] sm:$0xff] }
  0x22   : > { %3118 = vmatprep.mubr.msk.f32.mxu0 %vm366_vm1, %v3936_v7  ;;  %3167 = vmatpush3.msk.msra.mxu1 %vm463_vm0, %v363_v6  ;;  %v3952_v10 = vld [vmem:[%s3903_s8 + $0xc0] sm:$0xff]  ;;  %v3955_v11 = vld [vmem:[%s3903_s8 + $0x10] sm:$0xff]  ;;  %v3966_v12 = vld [vmem:[%s3903_s8 + $0xc8] sm:$0xff] }
  0x23   : > { %5108 = vst [vmem:[#allocation13_spill] sm:$0xff] %v3952_v10  ;;  %3119 = vmatmul.mubr.msk.f32.vlgmr.msra.gmra.mrb[0].mxu0 %vm366_vm1, %v3949_v9  ;;  %5109 = vst [vmem:[#allocation14_spill] sm:$0xff] %v3966_v12  ;;  %v3969_v13 = vld [vmem:[%s3903_s8 + $0x18] sm:$0xff]  ;;  %v3972_v14 = vld [vmem:[%s3903_s8 + $0xd0] sm:$0xff] }
  0x24   : > { %3149 = vmatmul.mubr.msk.f32.gmra.mrb[2].mxu1 %vm366_vm1, %v3929_v4  ;;  %3121 = vmatprep.mubr.msk.f32.mxu0 %vm366_vm1, %v3955_v11  ;;  %5110 = vst [vmem:[#allocation15_spill] sm:$0xff] %v3972_v14  ;;  %v3975_v15 = vld [vmem:[%s3903_s8 + $0x20] sm:$0xff]  ;;  %v3986_v16 = vld [vmem:[%s3903_s8 + $0xd8] sm:$0xff]  ;;  %v3989_v17 = vld [vmem:[%s3903_s8 + $0x28] sm:$0xff] }
  0x25   : > { %3151 = vmatprep.mubr.msk.f32.mxu1 %vm366_vm1, %v3932_v5  ;;  %5111 = vst [vmem:[#allocation16_spill] sm:$0xff] %v3986_v16  ;;  %v3992_v18 = vld [vmem:[%s3903_s8 + $0xe0] sm:$0xff]  ;;  %v3995_v19 = vld [vmem:[%s3903_s8 + $0x30] sm:$0xff]  ;;  %v4006_v20 = vld [vmem:[%s3903_s8 + $0xe8] sm:$0xff] }
  0x26   : > { %5112 = vst [vmem:[#allocation17_spill] sm:$0xff] %v3992_v18  ;;  %5113 = vst [vmem:[#allocation18_spill] sm:$0xff] %v4006_v20  ;;  %v4009_v21 = vld [vmem:[%s3903_s8 + $0x38] sm:$0xff]  ;;  %v4012_v22 = vld [vmem:[%s3903_s8 + $0xf0] sm:$0xff] }
  0x27   : > { %3122 = vmatmul.mubr.msk.f32.gmra.mrb[2].mxu0 %vm366_vm1, %v3969_v13  ;;  %5114 = vst [vmem:[#allocation19_spill] sm:$0xff] %v4012_v22  ;;  %v4015_v23 = vld [vmem:[%s3903_s8 + $0x40] sm:$0xff]  ;;  %v4026_v24 = vld [vmem:[%s3903_s8 + $0xf8] sm:$0xff]  ;;  %v4029_v25 = vld [vmem:[%s3903_s8 + $0x48] sm:$0xff] }
  0x28   : > { %3152 = vmatmul.mubr.msk.f32.gmra.mrb[4].mxu1 %vm366_vm1, %v3945_v8  ;;  %3124 = vmatprep.mubr.msk.f32.mxu0 %vm366_vm1, %v3975_v15  ;;  %5115 = vst [vmem:[#allocation20_spill] sm:$0xff] %v4026_v24  ;;  %v4032_v26 = vld [vmem:[%s3903_s8 + $0x50] sm:$0xff]  ;;  %v4043_v27 = vld [vmem:[%s3903_s8 + $0x58] sm:$0xff]  ;;  %v4046_v28 = vld [vmem:[%s3903_s8 + $0x60] sm:$0xff] }
  0x29   : > { %3154 = vmatprep.mubr.msk.f32.mxu1 %vm366_vm1, %v3952_v10  ;;  %5116 = vst [vmem:[#allocation21_spill] sm:$0xff] %v4046_v28  ;;  %v4057_v29 = vld [vmem:[%s3903_s8 + $0x68] sm:$0xff]  ;;  %v4060_v30 = vld [vmem:[%s3903_s8 + $0x70] sm:$0xff]  ;;  %v4071_v31 = vld [vmem:[%s3903_s8 + $0x78] sm:$0xff] }
  0x2a   : > { %5117 = vst [vmem:[#allocation22_spill] sm:$0xff] %v4057_v29  ;;  %5118 = vst [vmem:[#allocation23_spill] sm:$0xff] %v4060_v30  ;;  %v4074_v32 = vld [vmem:[%s3903_s8 + $0x80] sm:$0xff]  ;;  %v4085_v33 = vld [vmem:[%s3903_s8 + $0x88] sm:$0xff] }
  0x2b   : > { %3125 = vmatmul.mubr.msk.f32.gmra.mrb[4].mxu0 %vm366_vm1, %v3989_v17  ;;  %5119 = vst [vmem:[#allocation24_spill] sm:$0xff] %v4071_v31  ;;  %5120 = vst [vmem:[#allocation25_spill] sm:$0xff] %v4074_v32 }
  0x2c   : > { %3155 = vmatmul.mubr.msk.f32.gmra.mrb[6].mxu1 %vm366_vm1, %v3966_v12  ;;  %3127 = vmatprep.mubr.msk.f32.mxu0 %vm366_vm1, %v3995_v19  ;;  %5121 = vst [vmem:[#allocation26_spill] sm:$0xff] %v4085_v33 }
  0x2d   : > { %3157 = vmatprep.mubr.msk.f32.mxu1 %vm366_vm1, %v3972_v14 }
  0x2f   : > { %3128 = vmatmul.mubr.msk.f32.gmra.mrb[6].mxu0 %vm366_vm1, %v4009_v21 }
  0x30   : > { %3158 = vmatmul.mubr.msk.f32.gmra.mrb[8].mxu1 %vm366_vm1, %v3986_v16  ;;  %3130 = vmatprep.mubr.msk.f32.mxu0 %vm366_vm1, %v4015_v23 }
  0x31   : > { %3160 = vmatprep.mubr.msk.f32.mxu1 %vm366_vm1, %v3992_v18 }
  0x33   : > { %3131 = vmatmul.mubr.msk.f32.gmra.mrb[8].mxu0 %vm366_vm1, %v4029_v25 }
  0x34   : > { %3161 = vmatmul.mubr.msk.f32.gmra.mrb[10].mxu1 %vm366_vm1, %v4006_v20  ;;  %3133 = vmatprep.mubr.msk.f32.mxu0 %vm366_vm1, %v4032_v26 }
  0x35   : > { %3163 = vmatprep.mubr.msk.f32.mxu1 %vm366_vm1, %v4012_v22 }
  0x37   : > { %3134 = vmatmul.mubr.msk.f32.gmra.mrb[10].mxu0 %vm366_vm1, %v4043_v27 }
  0x38   : > { %3164 = vmatmul.mubr.msk.f32.gmra.mrb[12].mxu1 %vm366_vm1, %v4026_v24  ;;  %3136 = vmatprep.mubr.msk.f32.mxu0 %vm366_vm1, %v4046_v28 }
  0x39   : > { %3168 = vmatprep.mubr.msk.f32.mxu1 %vm366_vm1, %v3936_v7 }
  0x3b   : > { %3137 = vmatmul.mubr.msk.f32.gmra.mrb[12].mxu0 %vm366_vm1, %v4057_v29 }
  0x3c   : > { %3169 = vmatmul.mubr.msk.f32.vlgmr.msra.gmra.mrb[14].mxu1 %vm366_vm1, %v3949_v9  ;;  %3139 = vmatprep.mubr.msk.f32.mxu0 %vm366_vm1, %v4060_v30 }
  0x3d   : > { %3171 = vmatprep.mubr.msk.f32.mxu1 %vm366_vm1, %v3955_v11 }
  0x3f   : > { %3140 = vmatmul.mubr.msk.f32.gmra.mrb[14].mxu0 %vm366_vm1, %v4071_v31 }
  0x40   : > { %3172 = vmatmul.mubr.msk.f32.gmra.mrb[16].mxu1 %vm366_vm1, %v3969_v13  ;;  %3142 = vmatprep.mubr.msk.f32.mxu0 %vm366_vm1, %v4074_v32 }
  0x41   : > { %3174 = vmatprep.mubr.msk.f32.mxu1 %vm366_vm1, %v3975_v15 }
  0x43   : > { %3143 = vmatmul.mubr.msk.f32.gmra.mrb[16].mxu0 %vm366_vm1, %v4085_v33 }
  0x44   : > { %3175 = vmatmul.mubr.msk.f32.gmra.mrb[18].mxu1 %vm366_vm1, %v3989_v17  ;;  %3218 = vmatprep.mubr.msk.f32.mxu0 %vm366_vm1, %v3936_v7 }
  0x45   : > { %3177 = vmatprep.mubr.msk.f32.mxu1 %vm366_vm1, %v3995_v19 }
  0x48   : > { %3178 = vmatmul.mubr.msk.f32.gmra.mrb[20].mxu1 %vm366_vm1, %v4009_v21 }
  0x49   : > { %3180 = vmatprep.mubr.msk.f32.mxu1 %vm366_vm1, %v4015_v23 }
  0x4c   : > { %3181 = vmatmul.mubr.msk.f32.gmra.mrb[22].mxu1 %vm366_vm1, %v4029_v25 }
  0x4d   : > { %3183 = vmatprep.mubr.msk.f32.mxu1 %vm366_vm1, %v4032_v26 }
  0x50   : > { %3184 = vmatmul.mubr.msk.f32.gmra.mrb[24].mxu1 %vm366_vm1, %v4043_v27 }
  0x51   : > { %3186 = vmatprep.mubr.msk.f32.mxu1 %vm366_vm1, %v4046_v28 }
  0x54   : > { %3187 = vmatmul.mubr.msk.f32.gmra.mrb[26].mxu1 %vm366_vm1, %v4057_v29 }
  0x55   : > { %3189 = vmatprep.mubr.msk.f32.mxu1 %vm366_vm1, %v4060_v30 }
  0x58   : > { %3190 = vmatmul.mubr.msk.f32.gmra.mrb[28].mxu1 %vm366_vm1, %v4071_v31 }
  0x59   : > { %3192 = vmatprep.mubr.msk.f32.mxu1 %vm366_vm1, %v4074_v32 }
  0x5c   : > { %3193 = vmatmul.mubr.msk.f32.gmra.mrb[30].mxu1 %vm366_vm1, %v4085_v33 }
  0x5d   : > { %3195 = vmatprep.mubr.msk.f32.mxu1 %vm366_vm1, %v3907_v1 }
  0x60   : > { %3196 = vmatmul.mubr.msk.f32.gmra.mrb[32].mxu1 %vm366_vm1, %v3910_v2 }
  0x61   : > { %3198 = vmatprep.mubr.msk.f32.mxu1 %vm366_vm1, %v3913_v3 }
  0x64   : > { %3199 = vmatmul.mubr.msk.f32.gmra.mrb[34].mxu1 %vm366_vm1, %v3929_v4 }
  0x65   : > { %3201 = vmatprep.mubr.msk.f32.mxu1 %vm366_vm1, %v3932_v5 }
  0x68   : > { %3202 = vmatmul.mubr.msk.f32.gmra.mrb[36].mxu1 %vm366_vm1, %v3945_v8 }
  0x69   : > { %3204 = vmatprep.mubr.msk.f32.mxu1 %vm366_vm1, %v3952_v10 }
  0x6c   : > { %3205 = vmatmul.mubr.msk.f32.gmra.mrb[38].mxu1 %vm366_vm1, %v3966_v12 }
  0x6d   : > { %3207 = vmatprep.mubr.msk.f32.mxu1 %vm366_vm1, %v3972_v14 }
  0x70   : > { %3208 = vmatmul.mubr.msk.f32.gmra.mrb[40].mxu1 %vm366_vm1, %v3986_v16 }
  0x71   : > { %3210 = vmatprep.mubr.msk.f32.mxu1 %vm366_vm1, %v3992_v18 }
  0x74   : > { %3211 = vmatmul.mubr.msk.f32.gmra.mrb[42].mxu1 %vm366_vm1, %v4006_v20 }
  0x75   : > { %3213 = vmatprep.mubr.msk.f32.mxu1 %vm366_vm1, %v4012_v22 }
  0x78   : > { %3214 = vmatmul.mubr.msk.f32.gmra.mrb[44].mxu1 %vm366_vm1, %v4026_v24 }
  0xf3   : > { %v4141_v34 = vpop.f32.mrb[0].mxu1 }
  0xf4   : > { %v4143_v35 = vpop.f32.mrb[1].mxu1 }
  0xf6   : > { %v4149_v38 = vpop.f32.mrb[0].mxu0 }
  0xf7   : > { %v4145_v36 = vpop.f32.mrb[2].mxu1  ;;  %v533_v39 = vpop.f32.mrb[1].mxu0 }
  0xf8   : > { %v4147_v37 = vpop.f32.mrb[3].mxu1  ;;  %v4153_v41 = vmul.f32 0.17677669, %v533_v39 }
  0xfa   : > { %3018 = vmatprep.mubr.msk.f32.mxu1 %vm1180_vm2, %v4153_v41  ;;  %v4159_v43 = vpop.f32.mrb[2].mxu0 }
  0xfb   : > { %v4151_v40 = vpop.f32.mrb[4].mxu1  ;;  %v4161_v44 = vpop.f32.mrb[3].mxu0 }
  0xfc   : > { %v4155_v42 = vpop.f32.mrb[5].mxu1 }
  0xfe   : > { %v4167_v47 = vpop.f32.mrb[4].mxu0 }
  0xff   : > { %v4163_v45 = vpop.f32.mrb[6].mxu1  ;;  %v4169_v48 = vpop.f32.mrb[5].mxu0 }
 0x100   : > { %v4165_v46 = vpop.f32.mrb[7].mxu1 }
 0x102   : > { %v4175_v51 = vpop.f32.mrb[6].mxu0 }
 0x103   : > { %v4171_v49 = vpop.f32.mrb[8].mxu1  ;;  %v4177_v52 = vpop.f32.mrb[7].mxu0 }
 0x104   : > { %v4173_v50 = vpop.f32.mrb[9].mxu1 }
 0x106   : > { %v4187_v57 = vpop.f32.mrb[8].mxu0 }
 0x107   : > { %v4179_v53 = vpop.f32.mrb[10].mxu1  ;;  %v4189_v58 = vpop.f32.mrb[9].mxu0 }
 0x108   : > { %v4181_v54 = vpop.f32.mrb[11].mxu1 }
 0x10a   : > { %v4191_v0 = vpop.f32.mrb[10].mxu0 }
 0x10b   : > { %v4183_v55 = vpop.f32.mrb[12].mxu1  ;;  %v4193_v7 = vpop.f32.mrb[11].mxu0 }
 0x10c   : > { %v4185_v56 = vpop.f32.mrb[13].mxu1 }
 0x10e   : > { %v4195_v16 = vpop.f32.mrb[12].mxu0 }
 0x10f   : > { %v3170_v59 = vpop.f32.mrb[14].mxu1  ;;  %v4197_v12 = vpop.f32.mrb[13].mxu0 }
 0x110   : > { %v793_v60 = vpop.f32.mrb[15].mxu1 }
 0x111   : > { %v3269_v61 = vpack.c.bf16 %v3170_v59, %v793_v60 }
 0x112   : > { %v4199_v4 = vpop.f32.mrb[14].mxu0 }
 0x113   : > { %v3173_v62 = vpop.f32.mrb[16].mxu1 }
 0x114   : > { %v803_v63 = vpop.f32.mrb[17].mxu1 }
 0x115   : > { %v3275_v6 = vpack.c.bf16 %v3173_v62, %v803_v63  ;;  %v4201_v63 = vpop.f32.mrb[15].mxu0 }
 0x116   : > { %v4203_v33 = vpop.f32.mrb[16].mxu0 }
 0x117   : > { %v3176_v39 = vpop.f32.mrb[18].mxu1 }
 0x118   : > { %v813_v24 = vpop.f32.mrb[19].mxu1 }
 0x119   : > { %v3281_v22 = vpack.c.bf16 %v3176_v39, %v813_v24 }
 0x11b   : > { %v3179_v20 = vpop.f32.mrb[20].mxu1 }
 0x11c   : > { %v823_v18 = vpop.f32.mrb[21].mxu1 }
 0x11d   : > { %v3287_v14 = vpack.c.bf16 %v3179_v20, %v823_v18  ;;  %v4205_v20 = vpop.f32.mrb[17].mxu0 }
 0x11f   : > { %v3182_v10 = vpop.f32.mrb[22].mxu1 }
 0x120   : > { %v833_v8 = vpop.f32.mrb[23].mxu1 }
 0x121   : > { %v3293_v59 = vpack.c.bf16 %v3182_v10, %v833_v8  ;;  %v5122_v8 = vmov 0 }
 0x122   : > { %v5123_v8 = vsel %vm4209_vm3, 4294967295, %v5122_v8 }
 0x123   : > { %v3185_v60 = vpop.f32.mrb[24].mxu1  ;;  %5124 = vst [vmem:[#allocation27_spill] sm:$0xff] %v5123_v8 }
 0x124   : > { %v843_v5 = vpop.f32.mrb[25].mxu1 }
 0x125   : > { %v3299_v62 = vpack.c.bf16 %v3185_v60, %v843_v5 }
 0x127   : > { %v3188_v3 = vpop.f32.mrb[26].mxu1 }
 0x128   : > { %v853_v2 = vpop.f32.mrb[27].mxu1 }
 0x129   : > { %v3305_v24 = vpack.c.bf16 %v3188_v3, %v853_v2 }
 0x12b   : > { %v3191_v39 = vpop.f32.mrb[28].mxu1 }
 0x12c   : > { %v863_v1 = vpop.f32.mrb[29].mxu1 }
 0x12d   : > { %v3311_v18 = vpack.c.bf16 %v3191_v39, %v863_v1 }
 0x12f   : > { %v3194_v32 = vpop.f32.mrb[30].mxu1 }
 0x130   : > { %v873_v31 = vpop.f32.mrb[31].mxu1 }
 0x131   : > { %v3266_v5 = vpack.c.bf16 %v3194_v32, %v873_v31 }
 0x133   : > { %3268 = vmatprep.subr.msk.bf16.mxu1 %vm4209_vm3, %v3266_v5  ;;  %v3197_v2 = vpop.f32.mrb[32].mxu1 }
 0x134   : > { %3271 = vmatpush3.bf16.xpose.msk.msra.mxu1 %vm4209_vm3, %v3269_v61  ;;  %v883_v3 = vpop.f32.mrb[33].mxu1 }
 0x135   : > { %v3272_v1 = vpack.c.bf16 %v3197_v2, %v883_v3 }
 0x137   : > { %3274 = vmatprep.subr.msk.bf16.mxu1 %vm4209_vm3, %v3272_v1  ;;  %v3200_v10 = vpop.f32.mrb[34].mxu1 }
 0x138   : > { %v893_v60 = vpop.f32.mrb[35].mxu1 }
 0x139   : > { %v3278_v39 = vpack.c.bf16 %v3200_v10, %v893_v60 }
 0x13b   : > { %v3203_v30 = vpop.f32.mrb[36].mxu1 }
 0x13c   : > { %3277 = vmatpush3.bf16.xpose.msk.msra.mxu1 %vm4209_vm3, %v3275_v6  ;;  %v903_v31 = vpop.f32.mrb[37].mxu1 }
 0x13d   : > { %3280 = vmatprep.subr.msk.bf16.mxu1 %vm4209_vm3, %v3278_v39  ;;  %v3284_v32 = vpack.c.bf16 %v3203_v30, %v903_v31  ;;  %v5143_v39 = vld [vmem:[#allocation19_spill] sm:$0xff]  ;;  %v5144_v31 = vld [vmem:[#allocation20_spill] sm:$0xff] }
 0x13f   : > { %v3206_v5 = vpop.f32.mrb[38].mxu1 }
 0x140   : > { %v913_v29 = vpop.f32.mrb[39].mxu1 }
 0x141   : > { %v3290_v61 = vpack.c.bf16 %v3206_v5, %v913_v29 }
 0x143   : > { %v3209_v28 = vpop.f32.mrb[40].mxu1 }
 0x144   : > { %3283 = vmatpush3.bf16.xpose.msk.msra.mxu1 %vm4209_vm3, %v3281_v22  ;;  %v923_v2 = vpop.f32.mrb[41].mxu1  ;;  %v694_v22 = vmul.f32 0.17677669, %v4161_v44  ;;  %v700_v44 = vmul.f32 0.17677669, %v4189_v58 }
 0x145   : > { %3286 = vmatprep.subr.msk.bf16.mxu1 %vm4209_vm3, %v3284_v32  ;;  %v3296_v3 = vpack.c.bf16 %v3209_v28, %v923_v2  ;;  %v695_v28 = vmul.f32 0.17677669, %v4159_v43  ;;  %v699_v43 = vmul.f32 0.17677669, %v4175_v51  ;;  %v703_v51 = vmul.f32 0.17677669, %v4191_v0 }
 0x146   : > { %v706_v58 = vmul.f32 0.17677669, %v4201_v63  ;;  %v707_v0 = vmul.f32 0.17677669, %v4199_v4  ;;  %v711_v4 = vmul.f32 0.17677669, %v4141_v34 }
 0x147   : > { %v3212_v1 = vpop.f32.mrb[42].mxu1  ;;  %v715_v34 = vmul.f32 0.17677669, %v4151_v40  ;;  %v719_v40 = vmul.f32 0.17677669, %v4171_v49  ;;  %v5139_v63 = vld [vmem:[#allocation15_spill] sm:$0xff] }
 0x148   : > { %v933_v10 = vpop.f32.mrb[43].mxu1  ;;  %v723_v49 = vmul.f32 0.17677669, %v4183_v55  ;;  %v5137_v55 = vld [vmem:[#allocation13_spill] sm:$0xff] }
 0x149   : > { %v3302_v6 = vpack.c.bf16 %v3212_v1, %v933_v10 }
 0x14b   : > { %v3215_v60 = vpop.f32.mrb[44].mxu1 }
 0x14c   : > { %3289 = vmatpush3.bf16.xpose.msk.msra.mxu1 %vm4209_vm3, %v3287_v14  ;;  %v943_v30 = vpop.f32.mrb[45].mxu1  ;;  %v693_v14 = vmul.f32 0.17677669, %v4149_v38  ;;  %v697_v38 = vmul.f32 0.17677669, %v4167_v47 }
 0x14d   : > { %3292 = vmatprep.subr.msk.bf16.mxu1 %vm4209_vm3, %v3290_v61  ;;  %v3308_v29 = vpack.c.bf16 %v3215_v60, %v943_v30  ;;  %v701_v47 = vmul.f32 0.17677669, %v4187_v57  ;;  %v705_v57 = vmul.f32 0.17677669, %v4195_v16  ;;  %v709_v16 = vmul.f32 0.17677669, %v4203_v33 }
 0x14e   : > { %v713_v33 = vmul.f32 0.17677669, %v4145_v36  ;;  %v717_v36 = vmul.f32 0.17677669, %v4163_v45  ;;  %v721_v45 = vmul.f32 0.17677669, %v4179_v53 }
 0x14f   : > { %v5136_v53 = vld [vmem:[#allocation12_spill] sm:$0xff] }
 0x154   : > { %3295 = vmatpush3.bf16.xpose.msk.msra.mxu1 %vm4209_vm3, %v3293_v59  ;;  %v696_v59 = vmul.f32 0.17677669, %v4169_v48  ;;  %v702_v48 = vmul.f32 0.17677669, %v4193_v7  ;;  %v710_v7 = vmul.f32 0.17677669, %v4143_v35 }
 0x155   : > { %3298 = vmatprep.subr.msk.bf16.mxu1 %vm4209_vm3, %v3296_v3  ;;  %v714_v35 = vmul.f32 0.17677669, %v4155_v42  ;;  %v718_v42 = vmul.f32 0.17677669, %v4173_v50  ;;  %v722_v50 = vmul.f32 0.17677669, %v4185_v56 }
 0x156   : > { %v5138_v56 = vld [vmem:[#allocation14_spill] sm:$0xff] }
 0x15c   : > { %3301 = vmatpush3.bf16.xpose.msk.msra.mxu1 %vm4209_vm3, %v3299_v62  ;;  %v712_v62 = vmul.f32 0.17677669, %v4147_v37  ;;  %v716_v37 = vmul.f32 0.17677669, %v4165_v46  ;;  %v720_v46 = vmul.f32 0.17677669, %v4181_v54 }
 0x15d   : > { %3304 = vmatprep.subr.msk.bf16.mxu1 %vm4209_vm3, %v3302_v6  ;;  %v364_v54 = vld [vmem:[%s325_s29] sm:$0xf] }
 0x15e   : > { %3216 = vmatprep.subr.msk.mxu0 %vm463_vm0, %v364_v54 }
 0x15f   : > { %3217 = vmatpush3.msk.msra.mxu0 %vm463_vm0, %v364_v54 }
 0x160   : > { %3219 = vmatmul.mubr.msk.f32.vlgmr.msra.gmra.mrb[18].mxu0 %vm366_vm1, %v3949_v9  ;;  %v5125_v9 = vld [vmem:[#allocation21_spill] sm:$0xff] }
 0x161   : > { %3221 = vmatprep.mubr.msk.f32.mxu0 %vm366_vm1, %v3955_v11  ;;  %v5126_v11 = vld [vmem:[#allocation22_spill] sm:$0xff] }
 0x164   : > { %3307 = vmatpush3.bf16.xpose.msk.msra.mxu1 %vm4209_vm3, %v3305_v24  ;;  %3222 = vmatmul.mubr.msk.f32.gmra.mrb[20].mxu0 %vm366_vm1, %v3969_v13  ;;  %v5127_v13 = vld [vmem:[#allocation23_spill] sm:$0xff]  ;;  %v5140_v24 = vld [vmem:[#allocation16_spill] sm:$0xff] }
 0x165   : > { %3310 = vmatprep.subr.msk.bf16.mxu1 %vm4209_vm3, %v3308_v29  ;;  %3224 = vmatprep.mubr.msk.f32.mxu0 %vm366_vm1, %v3975_v15  ;;  %v5128_v15 = vld [vmem:[#allocation24_spill] sm:$0xff] }
 0x168   : > { %3225 = vmatmul.mubr.msk.f32.gmra.mrb[22].mxu0 %vm366_vm1, %v3989_v17  ;;  %v5129_v17 = vld [vmem:[#allocation25_spill] sm:$0xff] }
 0x169   : > { %3227 = vmatprep.mubr.msk.f32.mxu0 %vm366_vm1, %v3995_v19  ;;  %v5130_v19 = vld [vmem:[#allocation26_spill] sm:$0xff] }
 0x16c   : > { %3313 = vmatpush3.bf16.xpose.msk.msra.mxu1 %vm4209_vm3, %v3311_v18  ;;  %3228 = vmatmul.mubr.msk.f32.gmra.mrb[24].mxu0 %vm366_vm1, %v4009_v21  ;;  %v5131_v21 = vld [vmem:[#allocation7_spill] sm:$0xff]  ;;  %v5141_v18 = vld [vmem:[#allocation17_spill] sm:$0xff] }
 0x16d   : > { %3230 = vmatprep.mubr.msk.f32.mxu0 %vm366_vm1, %v4015_v23  ;;  %v5132_v23 = vld [vmem:[#allocation8_spill] sm:$0xff] }
 0x170   : > { %3231 = vmatmul.mubr.msk.f32.gmra.mrb[26].mxu0 %vm366_vm1, %v4029_v25  ;;  %v5133_v25 = vld [vmem:[#allocation9_spill] sm:$0xff] }
 0x171   : > { %3233 = vmatprep.mubr.msk.f32.mxu0 %vm366_vm1, %v4032_v26  ;;  %v5134_v26 = vld [vmem:[#allocation10_spill] sm:$0xff] }
 0x173   : > { %3019 = vmatmul.mubr.msk.f32.vlgmr.msra.gmra.mrb[46].mxu1 %vm1180_vm2, %v4153_v41  ;;  %v698_v41 = vmul.f32 0.17677669, %v4177_v52  ;;  %v704_v52 = vmul.f32 0.17677669, %v4197_v12  ;;  %v708_v12 = vmul.f32 0.17677669, %v4205_v20 }
 0x174   : > { %3020 = vmatprep.mubr.msk.f32.mxu1 %vm1180_vm2, %v693_v14  ;;  %3234 = vmatmul.mubr.msk.f32.gmra.mrb[28].mxu0 %vm366_vm1, %v4043_v27  ;;  %v5135_v27 = vld [vmem:[#allocation11_spill] sm:$0xff]  ;;  %v5142_v20 = vld [vmem:[#allocation18_spill] sm:$0xff] }
 0x175   : > { %3236 = vmatprep.mubr.msk.f32.mxu0 %vm366_vm1, %v5125_v9 }
 0x177   : > { %3021 = vmatmul.mubr.msk.f32.gmra.mrb[48].mxu1 %vm1180_vm2, %v693_v14 }
 0x178   : > { %3022 = vmatprep.mubr.msk.f32.mxu1 %vm1180_vm2, %v694_v22  ;;  %3237 = vmatmul.mubr.msk.f32.gmra.mrb[30].mxu0 %vm366_vm1, %v5126_v11 }
 0x179   : > { %3239 = vmatprep.mubr.msk.f32.mxu0 %vm366_vm1, %v5127_v13 }
 0x17b   : > { %3023 = vmatmul.mubr.msk.f32.gmra.mrb[50].mxu1 %vm1180_vm2, %v694_v22 }
 0x17c   : > { %3024 = vmatprep.mubr.msk.f32.mxu1 %vm1180_vm2, %v695_v28  ;;  %3240 = vmatmul.mubr.msk.f32.gmra.mrb[32].mxu0 %vm366_vm1, %v5128_v15 }
 0x17d   : > { %3242 = vmatprep.mubr.msk.f32.mxu0 %vm366_vm1, %v5129_v17 }
 0x17f   : > { %3025 = vmatmul.mubr.msk.f32.gmra.mrb[52].mxu1 %vm1180_vm2, %v695_v28 }
 0x180   : > { %3026 = vmatprep.mubr.msk.f32.mxu1 %vm1180_vm2, %v696_v59  ;;  %3243 = vmatmul.mubr.msk.f32.gmra.mrb[34].mxu0 %vm366_vm1, %v5130_v19 }
 0x181   : > { %3245 = vmatprep.mubr.msk.f32.mxu0 %vm366_vm1, %v5131_v21 }
 0x183   : > { %3027 = vmatmul.mubr.msk.f32.gmra.mrb[54].mxu1 %vm1180_vm2, %v696_v59 }
 0x184   : > { %3028 = vmatprep.mubr.msk.f32.mxu1 %vm1180_vm2, %v697_v38  ;;  %3246 = vmatmul.mubr.msk.f32.gmra.mrb[36].mxu0 %vm366_vm1, %v5132_v23 }
 0x185   : > { %3248 = vmatprep.mubr.msk.f32.mxu0 %vm366_vm1, %v5133_v25 }
 0x187   : > { %3029 = vmatmul.mubr.msk.f32.gmra.mrb[56].mxu1 %vm1180_vm2, %v697_v38 }
 0x188   : > { %3030 = vmatprep.mubr.msk.f32.mxu1 %vm1180_vm2, %v698_v41  ;;  %3249 = vmatmul.mubr.msk.f32.gmra.mrb[38].mxu0 %vm366_vm1, %v5134_v26 }
 0x189   : > { %3251 = vmatprep.mubr.msk.f32.mxu0 %vm366_vm1, %v5135_v27 }
 0x18b   : > { %3031 = vmatmul.mubr.msk.f32.gmra.mrb[58].mxu1 %vm1180_vm2, %v698_v41 }
 0x18c   : > { %3032 = vmatprep.mubr.msk.f32.mxu1 %vm1180_vm2, %v699_v43  ;;  %3252 = vmatmul.mubr.msk.f32.gmra.mrb[40].mxu0 %vm366_vm1, %v5136_v53 }
 0x18d   : > { %3254 = vmatprep.mubr.msk.f32.mxu0 %vm366_vm1, %v5137_v55 }
 0x18f   : > { %3033 = vmatmul.mubr.msk.f32.gmra.mrb[60].mxu1 %vm1180_vm2, %v699_v43 }
 0x190   : > { %3034 = vmatprep.mubr.msk.f32.mxu1 %vm1180_vm2, %v700_v44  ;;  %3255 = vmatmul.mubr.msk.f32.gmra.mrb[42].mxu0 %vm366_vm1, %v5138_v56 }
 0x191   : > { %3257 = vmatprep.mubr.msk.f32.mxu0 %vm366_vm1, %v5139_v63 }
 0x193   : > { %3035 = vmatmul.mubr.msk.f32.gmra.mrb[62].mxu1 %vm1180_vm2, %v700_v44 }
 0x194   : > { %3036 = vmatprep.mubr.msk.f32.mxu1 %vm1180_vm2, %v701_v47  ;;  %3258 = vmatmul.mubr.msk.f32.gmra.mrb[44].mxu0 %vm366_vm1, %v5140_v24 }
 0x195   : > { %3260 = vmatprep.mubr.msk.f32.mxu0 %vm366_vm1, %v5141_v18 }
 0x197   : > { %3037 = vmatmul.mubr.msk.f32.gmra.mrb[64].mxu1 %vm1180_vm2, %v701_v47 }
 0x198   : > { %3038 = vmatprep.mubr.msk.f32.mxu1 %vm1180_vm2, %v702_v48  ;;  %3261 = vmatmul.mubr.msk.f32.gmra.mrb[46].mxu0 %vm366_vm1, %v5142_v20 }
 0x199   : > { %3263 = vmatprep.mubr.msk.f32.mxu0 %vm366_vm1, %v5143_v39 }
 0x19b   : > { %3039 = vmatmul.mubr.msk.f32.gmra.mrb[66].mxu1 %vm1180_vm2, %v702_v48 }
 0x19c   : > { %3040 = vmatprep.mubr.msk.f32.mxu1 %vm1180_vm2, %v703_v51  ;;  %3264 = vmatmul.mubr.msk.f32.gmra.mrb[48].mxu0 %vm366_vm1, %v5144_v31 }
 0x19f   : > { %3041 = vmatmul.mubr.msk.f32.gmra.mrb[68].mxu1 %vm1180_vm2, %v703_v51 }
 0x1a0   : > { %3042 = vmatprep.mubr.msk.f32.mxu1 %vm1180_vm2, %v704_v52 }
 0x1a3   : > { %3043 = vmatmul.mubr.msk.f32.gmra.mrb[70].mxu1 %vm1180_vm2, %v704_v52 }
 0x1a4   : > { %3044 = vmatprep.mubr.msk.f32.mxu1 %vm1180_vm2, %v705_v57 }
 0x1a7   : > { %3045 = vmatmul.mubr.msk.f32.gmra.mrb[72].mxu1 %vm1180_vm2, %v705_v57 }
 0x1a8   : > { %3046 = vmatprep.mubr.msk.f32.mxu1 %vm1180_vm2, %v706_v58 }
 0x1ab   : > { %3047 = vmatmul.mubr.msk.f32.gmra.mrb[74].mxu1 %vm1180_vm2, %v706_v58 }
 0x1ac   : > { %3048 = vmatprep.mubr.msk.f32.mxu1 %vm1180_vm2, %v707_v0 }
 0x1af   : > { %3049 = vmatmul.mubr.msk.f32.gmra.mrb[76].mxu1 %vm1180_vm2, %v707_v0 }
 0x1b0   : > { %3050 = vmatprep.mubr.msk.f32.mxu1 %vm1180_vm2, %v708_v12 }
 0x1b3   : > { %3051 = vmatmul.mubr.msk.f32.gmra.mrb[78].mxu1 %vm1180_vm2, %v708_v12 }
 0x1b4   : > { %3052 = vmatprep.mubr.msk.f32.mxu1 %vm1180_vm2, %v709_v16 }
 0x1b7   : > { %3053 = vmatmul.mubr.msk.f32.gmra.mrb[80].mxu1 %vm1180_vm2, %v709_v16 }
 0x1b8   : > { %3054 = vmatprep.mubr.msk.f32.mxu1 %vm1180_vm2, %v710_v7 }
 0x1bb   : > { %3055 = vmatmul.mubr.msk.f32.gmra.mrb[82].mxu1 %vm1180_vm2, %v710_v7 }
 0x1bc   : > { %3056 = vmatprep.mubr.msk.f32.mxu1 %vm1180_vm2, %v711_v4 }
 0x1bf   : > { %3057 = vmatmul.mubr.msk.f32.gmra.mrb[84].mxu1 %vm1180_vm2, %v711_v4 }
 0x1c0   : > { %3058 = vmatprep.mubr.msk.f32.mxu1 %vm1180_vm2, %v712_v62 }
 0x1c3   : > { %3059 = vmatmul.mubr.msk.f32.gmra.mrb[86].mxu1 %vm1180_vm2, %v712_v62 }
 0x1c4   : > { %3060 = vmatprep.mubr.msk.f32.mxu1 %vm1180_vm2, %v713_v33 }
 0x1c7   : > { %3061 = vmatmul.mubr.msk.f32.gmra.mrb[88].mxu1 %vm1180_vm2, %v713_v33 }
 0x1c8   : > { %3062 = vmatprep.mubr.msk.f32.mxu1 %vm1180_vm2, %v714_v35 }
 0x1cb   : > { %3063 = vmatmul.mubr.msk.f32.gmra.mrb[90].mxu1 %vm1180_vm2, %v714_v35 }
 0x1cc   : > { %3064 = vmatprep.mubr.msk.f32.mxu1 %vm1180_vm2, %v715_v34 }
 0x1cf   : > { %3065 = vmatmul.mubr.msk.f32.gmra.mrb[92].mxu1 %vm1180_vm2, %v715_v34 }
 0x1d0   : > { %3066 = vmatprep.mubr.msk.f32.mxu1 %vm1180_vm2, %v716_v37 }
 0x1d3   : > { %3067 = vmatmul.mubr.msk.f32.gmra.mrb[94].mxu1 %vm1180_vm2, %v716_v37 }
 0x1d4   : > { %3068 = vmatprep.mubr.msk.f32.mxu1 %vm1180_vm2, %v717_v36 }
 0x1d7   : > { %3069 = vmatmul.mubr.msk.f32.gmra.mrb[96].mxu1 %vm1180_vm2, %v717_v36 }
 0x1d8   : > { %3070 = vmatprep.mubr.msk.f32.mxu1 %vm1180_vm2, %v718_v42 }
 0x1db   : > { %3071 = vmatmul.mubr.msk.f32.gmra.mrb[98].mxu1 %vm1180_vm2, %v718_v42 }
 0x1dc   : > { %3072 = vmatprep.mubr.msk.f32.mxu1 %vm1180_vm2, %v719_v40 }
 0x1df   : > { %3073 = vmatmul.mubr.msk.f32.gmra.mrb[100].mxu1 %vm1180_vm2, %v719_v40 }
 0x1e0   : > { %3074 = vmatprep.mubr.msk.f32.mxu1 %vm1180_vm2, %v720_v46 }
 0x1e3   : > { %3075 = vmatmul.mubr.msk.f32.gmra.mrb[102].mxu1 %vm1180_vm2, %v720_v46 }
 0x1e4   : > { %3076 = vmatprep.mubr.msk.f32.mxu1 %vm1180_vm2, %v721_v45 }
 0x1e7   : > { %3077 = vmatmul.mubr.msk.f32.gmra.mrb[104].mxu1 %vm1180_vm2, %v721_v45 }
 0x1e8   : > { %3078 = vmatprep.mubr.msk.f32.mxu1 %vm1180_vm2, %v722_v50 }
 0x1eb   : > { %3079 = vmatmul.mubr.msk.f32.gmra.mrb[106].mxu1 %vm1180_vm2, %v722_v50 }
 0x1ec   : > { %3080 = vmatprep.mubr.msk.f32.mxu1 %vm1180_vm2, %v723_v49 }
 0x1ef   : > { %3081 = vmatmul.mubr.msk.f32.gmra.mrb[108].mxu1 %vm1180_vm2, %v723_v49 }
 0x246   : > { %v4408_v32 = vpop.f32.mrb[46].mxu1 }
 0x247   : > { %v4410_v5 = vpop.f32.mrb[47].mxu1 }
 0x248   : > { %v1630_v61 = vmax.f32 %v4408_v32, %v4410_v5 }
 0x24a   : > { %1631 = vmax.xlane.f32.xlu0 %v1630_v61  ;;  %v4414_v2 = vpop.f32.mrb[48].mxu1 }
 0x24b   : > { %v4416_v3 = vpop.f32.mrb[49].mxu1 }
 0x24c   : > { %v1633_v1 = vmax.f32 %v4414_v2, %v4416_v3 }
 0x24e   : > { %1634 = vmax.xlane.f32.xlu0 %v1633_v1  ;;  %v4420_v10 = vpop.f32.mrb[50].mxu1 }
 0x24f   : > { %v4422_v6 = vpop.f32.mrb[51].mxu1 }
 0x250   : > { %v1636_v60 = vmax.f32 %v4420_v10, %v4422_v6 }
 0x252   : > { %1637 = vmax.xlane.f32.xlu1 %v1636_v60  ;;  %v4426_v30 = vpop.f32.mrb[52].mxu1 }
 0x253   : > { %v4428_v29 = vpop.f32.mrb[53].mxu1 }
 0x254   : > { %v1639_v14 = vmax.f32 %v4426_v30, %v4428_v29 }
 0x256   : > { %1640 = vmax.xlane.f32.xlu1 %v1639_v14  ;;  %v4432_v22 = vpop.f32.mrb[54].mxu1 }
 0x257   : > { %v4434_v28 = vpop.f32.mrb[55].mxu1 }
 0x258   : > { %v1642_v59 = vmax.f32 %v4432_v22, %v4434_v28 }
 0x25a   : > { %1643 = vmax.xlane.f32.xlu0 %v1642_v59  ;;  %v4438_v38 = vpop.f32.mrb[56].mxu1 }
 0x25b   : > { %v4440_v41 = vpop.f32.mrb[57].mxu1 }
 0x25c   : > { %v1645_v43 = vmax.f32 %v4438_v38, %v4440_v41 }
 0x25e   : > { %1646 = vmax.xlane.f32.xlu1 %v1645_v43  ;;  %v4444_v44 = vpop.f32.mrb[58].mxu1 }
 0x25f   : > { %v4446_v47 = vpop.f32.mrb[59].mxu1 }
 0x260   : > { %v1648_v48 = vmax.f32 %v4444_v44, %v4446_v47 }
 0x262   : > { %1649 = vmax.xlane.f32.xlu0 %v1648_v48  ;;  %v4450_v51 = vpop.f32.mrb[60].mxu1 }
 0x263   : > { %v4452_v52 = vpop.f32.mrb[61].mxu1 }
 0x264   : > { %v1651_v57 = vmax.f32 %v4450_v51, %v4452_v52 }
 0x266   : > { %1652 = vmax.xlane.f32.xlu1 %v1651_v57  ;;  %v4456_v58 = vpop.f32.mrb[62].mxu1 }
 0x267   : > { %v4458_v0 = vpop.f32.mrb[63].mxu1 }
 0x268   : > { %v1654_v12 = vmax.f32 %v4456_v58, %v4458_v0 }
 0x26a   : > { %1655 = vmax.xlane.f32.xlu0 %v1654_v12  ;;  %v4462_v16 = vpop.f32.mrb[64].mxu1 }
 0x26b   : > { %v4464_v7 = vpop.f32.mrb[65].mxu1 }
 0x26c   : > { %v1657_v4 = vmax.f32 %v4462_v16, %v4464_v7 }
 0x26e   : > { %1658 = vmax.xlane.f32.xlu1 %v1657_v4  ;;  %v4468_v62 = vpop.f32.mrb[66].mxu1 }
 0x26f   : > { %v4470_v33 = vpop.f32.mrb[67].mxu1 }
 0x270   : > { %v1660_v35 = vmax.f32 %v4468_v62, %v4470_v33 }
 0x272   : > { %1661 = vmax.xlane.f32.xlu0 %v1660_v35  ;;  %v4474_v34 = vpop.f32.mrb[68].mxu1 }
 0x273   : > { %v4476_v37 = vpop.f32.mrb[69].mxu1 }
 0x274   : > { %v1663_v36 = vmax.f32 %v4474_v34, %v4476_v37 }
 0x276   : > { %1664 = vmax.xlane.f32.xlu1 %v1663_v36  ;;  %v4480_v42 = vpop.f32.mrb[70].mxu1 }
 0x277   : > { %v4482_v40 = vpop.f32.mrb[71].mxu1 }
 0x278   : > { %v1666_v46 = vmax.f32 %v4480_v42, %v4482_v40 }
 0x27a   : > { %1667 = vmax.xlane.f32.xlu0 %v1666_v46  ;;  %v4486_v45 = vpop.f32.mrb[72].mxu1 }
 0x27b   : > { %v4488_v50 = vpop.f32.mrb[73].mxu1 }
 0x27c   : > { %v1669_v49 = vmax.f32 %v4486_v45, %v4488_v50 }
 0x27e   : > { %1670 = vmax.xlane.f32.xlu1 %v1669_v49  ;;  %v4492_v54 = vpop.f32.mrb[74].mxu1 }
 0x27f   : > { %v4494_v9 = vpop.f32.mrb[75].mxu1 }
 0x280   : > { %v1672_v11 = vmax.f32 %v4492_v54, %v4494_v9 }
 0x282   : > { %1673 = vmax.xlane.f32.xlu0 %v1672_v11  ;;  %v4498_v13 = vpop.f32.mrb[76].mxu1 }
 0x283   : > { %v4500_v15 = vpop.f32.mrb[77].mxu1 }
 0x284   : > { %v1675_v17 = vmax.f32 %v4498_v13, %v4500_v15 }
 0x286   : > { %1676 = vmax.xlane.f32.xlu1 %v1675_v17  ;;  %v4504_v19 = vpop.f32.mrb[78].mxu1 }
 0x287   : > { %v4506_v21 = vpop.f32.mrb[79].mxu1 }
 0x288   : > { %v1678_v23 = vmax.f32 %v4504_v19, %v4506_v21 }
 0x28a   : > { %1679 = vmax.xlane.f32.xlu0 %v1678_v23  ;;  %v4510_v25 = vpop.f32.mrb[80].mxu1 }
 0x28b   : > { %v4512_v26 = vpop.f32.mrb[81].mxu1 }
 0x28c   : > { %v1681_v27 = vmax.f32 %v4510_v25, %v4512_v26 }
 0x28e   : > { %1682 = vmax.xlane.f32.xlu1 %v1681_v27  ;;  %v4516_v53 = vpop.f32.mrb[82].mxu1 }
 0x28f   : > { %v4518_v55 = vpop.f32.mrb[83].mxu1 }
 0x290   : > { %v1684_v56 = vmax.f32 %v4516_v53, %v4518_v55 }
 0x292   : > { %1685 = vmax.xlane.f32.xlu0 %v1684_v56  ;;  %v4522_v63 = vpop.f32.mrb[84].mxu1 }
 0x293   : > { %v4524_v24 = vpop.f32.mrb[85].mxu1 }
 0x294   : > { %v1687_v18 = vmax.f32 %v4522_v63, %v4524_v24 }
 0x296   : > { %1688 = vmax.xlane.f32.xlu1 %v1687_v18  ;;  %v4528_v20 = vpop.f32.mrb[86].mxu1 }
 0x297   : > { %v4530_v39 = vpop.f32.mrb[87].mxu1 }
 0x298   : > { %v1690_v31 = vmax.f32 %v4528_v20, %v4530_v39 }
 0x29a   : > { %1691 = vmax.xlane.f32.xlu0 %v1690_v31  ;;  %v4534_v61 = vpop.f32.mrb[88].mxu1 }
 0x29b   : > { %v4536_v1 = vpop.f32.mrb[89].mxu1 }
 0x29c   : > { %v1693_v60 = vmax.f32 %v4534_v61, %v4536_v1 }
 0x29e   : > { %1694 = vmax.xlane.f32.xlu1 %v1693_v60  ;;  %v4540_v14 = vpop.f32.mrb[90].mxu1 }
 0x29f   : > { %v4542_v59 = vpop.f32.mrb[91].mxu1 }
 0x2a0   : > { %v1696_v43 = vmax.f32 %v4540_v14, %v4542_v59 }
 0x2a2   : > { %1697 = vmax.xlane.f32.xlu0 %v1696_v43  ;;  %v4546_v48 = vpop.f32.mrb[92].mxu1 }
 0x2a3   : > { %v4548_v57 = vpop.f32.mrb[93].mxu1 }
 0x2a4   : > { %5145 = vst [vmem:[#allocation21_spill] sm:$0xff] %v4548_v57  ;;  %v1699_v12 = vmax.f32 %v4546_v48, %v4548_v57 }
 0x2a6   : > { %1700 = vmax.xlane.f32.xlu0 %v1699_v12  ;;  %v4552_v4 = vpop.f32.mrb[94].mxu1 }
 0x2a7   : > { %5146 = vst [vmem:[#allocation22_spill] sm:$0xff] %v4552_v4  ;;  %v4554_v35 = vpop.f32.mrb[95].mxu1 }
 0x2a8   : > { %5147 = vst [vmem:[#allocation23_spill] sm:$0xff] %v4554_v35  ;;  %v1702_v36 = vmax.f32 %v4552_v4, %v4554_v35 }
 0x2aa   : > { %1703 = vmax.xlane.f32.xlu0 %v1702_v36  ;;  %v4558_v46 = vpop.f32.mrb[96].mxu1 }
 0x2ab   : > { %5148 = vst [vmem:[#allocation24_spill] sm:$0xff] %v4558_v46  ;;  %v4560_v49 = vpop.f32.mrb[97].mxu1 }
 0x2ac   : > { %5149 = vst [vmem:[#allocation25_spill] sm:$0xff] %v4560_v49  ;;  %v1705_v11 = vmax.f32 %v4558_v46, %v4560_v49 }
 0x2ae   : > { %1706 = vmax.xlane.f32.xlu0 %v1705_v11  ;;  %v4564_v17 = vpop.f32.mrb[98].mxu1 }
 0x2af   : > { %5150 = vst [vmem:[#allocation26_spill] sm:$0xff] %v4564_v17  ;;  %v4566_v23 = vpop.f32.mrb[99].mxu1 }
 0x2b0   : > { %5151 = vst [vmem:[#allocation7_spill] sm:$0xff] %v4566_v23  ;;  %v1708_v27 = vmax.f32 %v4564_v17, %v4566_v23 }
 0x2b2   : > { %1709 = vmax.xlane.f32.xlu0 %v1708_v27  ;;  %v4570_v56 = vpop.f32.mrb[100].mxu1 }
 0x2b3   : > { %5152 = vst [vmem:[#allocation8_spill] sm:$0xff] %v4570_v56  ;;  %v4572_v18 = vpop.f32.mrb[101].mxu1 }
 0x2b4   : > { %5153 = vst [vmem:[#allocation9_spill] sm:$0xff] %v4572_v18  ;;  %v1711_v31 = vmax.f32 %v4570_v56, %v4572_v18 }
 0x2b6   : > { %1712 = vmax.xlane.f32.xlu0 %v1711_v31  ;;  %v4576_v60 = vpop.f32.mrb[102].mxu1 }
 0x2b7   : > { %5154 = vst [vmem:[#allocation10_spill] sm:$0xff] %v4576_v60  ;;  %v4578_v43 = vpop.f32.mrb[103].mxu1 }
 0x2b8   : > { %5155 = vst [vmem:[#allocation11_spill] sm:$0xff] %v4578_v43  ;;  %v1714_v12 = vmax.f32 %v4576_v60, %v4578_v43  ;;  %v3220_v43 = vpop.f32.mrb[18].mxu0 }
 0x2b9   : > { %v1021_v60 = vpop.f32.mrb[19].mxu0 }
 0x2ba   : > { %1715 = vmax.xlane.f32.xlu0 %v1714_v12  ;;  %v4582_v36 = vpop.f32.mrb[104].mxu1  ;;  %v3315_v17 = vpack.c.bf16 %v3220_v43, %v1021_v60 }
 0x2bb   : > { %5156 = vst [vmem:[#allocation12_spill] sm:$0xff] %v4582_v36  ;;  %v4584_v11 = vpop.f32.mrb[105].mxu1 }
 0x2bc   : > { %5157 = vst [vmem:[#allocation13_spill] sm:$0xff] %v4584_v11  ;;  %v1717_v27 = vmax.f32 %v4582_v36, %v4584_v11  ;;  %v3776_v11 = vmov 0.0|0.0  }
 0x2bd   : > { %3314 = vmatprep.subr.bf16.mxu0 %v3776_v11 }
 0x2be   : > { %1718 = vmax.xlane.f32.xlu0 %v1717_v27  ;;  %v4588_v8 = vpop.f32.mrb[106].mxu1  ;;  %v3223_v27 = vpop.f32.mrb[20].mxu0  ;;  %3316 = vmatpush1.bf16.msra.mxu0 %v3315_v17 }
 0x2bf   : > { %5158 = vst [vmem:[#allocation14_spill] sm:$0xff] %v4588_v8  ;;  %v4590_v18 = vpop.f32.mrb[107].mxu1  ;;  %v1031_v36 = vpop.f32.mrb[21].mxu0  ;;  %3317 = vmatprep.subr.bf16.mxu0 %v3776_v11 }
 0x2c0   : > { %5159 = vst [vmem:[#allocation15_spill] sm:$0xff] %v4590_v18  ;;  %v1720_v31 = vmax.f32 %v4588_v8, %v4590_v18  ;;  %v3226_v18 = vpop.f32.mrb[22].mxu0 }
 0x2c1   : > { %v1041_v8 = vpop.f32.mrb[23].mxu0 }
 0x2c2   : > { %1721 = vmax.xlane.f32.xlu0 %v1720_v31  ;;  %v4594_v56 = vpop.f32.mrb[108].mxu1  ;;  %v3318_v31 = vpack.c.bf16 %v3223_v27, %v1031_v36  ;;  %v3321_v49 = vpack.c.bf16 %v3226_v18, %v1041_v8  ;;  %v3229_v46 = vpop.f32.mrb[24].mxu0 }
 0x2c3   : > { %5160 = vst [vmem:[#allocation16_spill] sm:$0xff] %v4594_v56  ;;  %v4596_v12 = vpop.f32.mrb[109].mxu1 }
 0x2c4   : > { %5161 = vst [vmem:[#allocation17_spill] sm:$0xff] %v4596_v12  ;;  %v1723_v23 = vmax.f32 %v4594_v56, %v4596_v12  ;;  %3319 = vmatpush1.bf16.msra.mxu0 %v3318_v31  ;;  %v1051_v12 = vpop.f32.mrb[25].mxu0 }
 0x2c5   : > { %3320 = vmatprep.subr.bf16.mxu0 %v3776_v11  ;;  %v3324_v60 = vpack.c.bf16 %v3229_v46, %v1051_v12  ;;  %v3232_v43 = vpop.f32.mrb[26].mxu0 }
 0x2c6   : > { %1724 = vmax.xlane.f32.xlu0 %v1723_v23  ;;  %v1061_v23 = vpop.f32.mrb[27].mxu0 }
 0x2c7   : > { %v3327_v17 = vpack.c.bf16 %v3232_v43, %v1061_v23  ;;  %v3235_v56 = vpop.f32.mrb[28].mxu0 }
 0x2c8   : > { %3322 = vmatpush1.bf16.msra.mxu0 %v3321_v49  ;;  %v1071_v27 = vpop.f32.mrb[29].mxu0 }
 0x2c9   : > { %3323 = vmatprep.subr.bf16.mxu0 %v3776_v11  ;;  %v3330_v18 = vpack.c.bf16 %v3235_v56, %v1071_v27  ;;  %v3238_v31 = vpop.f32.mrb[30].mxu0 }
 0x2ca   : > { %v1081_v12 = vpop.f32.mrb[31].mxu0 }
 0x2cb   : > { %v3333_v4 = vpack.c.bf16 %v3238_v31, %v1081_v12 }
 0x2cc   : > { %3325 = vmatpush1.bf16.msra.mxu0 %v3324_v60 }
 0x2cd   : > { %3326 = vmatprep.subr.bf16.mxu0 %v3776_v11 }
 0x2d0   : > { %3328 = vmatpush1.bf16.msra.mxu0 %v3327_v17  ;;  %v3241_v17 = vpop.f32.mrb[32].mxu0 }
 0x2d1   : > { %3329 = vmatprep.subr.bf16.mxu0 %v3776_v11 }
 0x2d4   : > { %3331 = vmatpush1.bf16.msra.mxu0 %v3330_v18 }
 0x2d5   : > { %3332 = vmatprep.subr.bf16.mxu0 %v3776_v11 }
 0x2d7   : > { %v1632_v36 = vpop.xlane.xlu0 %1631 }
 0x2d8   : > { %v1726_v8 = vsub.f32 %v4408_v32, %v1632_v36  ;;  %v1727_v49 = vsub.f32 %v4410_v5, %v1632_v36  ;;  %3334 = vmatpush1.bf16.msra.mxu0 %v3333_v4  ;;  %v1091_v5 = vpop.f32.mrb[33].mxu0 }
 0x2d9   : > { %v3336_v36 = vpack.c.bf16 %v3241_v17, %v1091_v5  ;;  %3335 = vmatprep.subr.bf16.mxu0 %v3776_v11 }
 0x2da   : > { %v1790_v35 = vmul.f32 1.442695, %v1726_v8  ;;  %v1792_v46 = vmul.f32 1.442695, %v1727_v49 }
 0x2db   : > { %v1635_v60 = vpop.xlane.xlu0 %1634 }
 0x2dc   : > { %3487 = vpow2.f32 %v1790_v35  ;;  %v1728_v43 = vsub.f32 %v4414_v2, %v1635_v60  ;;  %v1729_v23 = vsub.f32 %v4416_v3, %v1635_v60  ;;  %v3244_v35 = vpop.f32.mrb[34].mxu0  ;;  %3337 = vmatpush1.bf16.msra.mxu0 %v3336_v36 }
 0x2dd   : > { %3489 = vpow2.f32 %v1792_v46  ;;  %v1101_v3 = vpop.f32.mrb[35].mxu0  ;;  %3338 = vmatprep.subr.bf16.mxu0 %v3776_v11 }
 0x2de   : > { %v1794_v32 = vmul.f32 1.442695, %v1728_v43  ;;  %v1796_v57 = vmul.f32 1.442695, %v1729_v23  ;;  %v3339_v31 = vpack.c.bf16 %v3244_v35, %v1101_v3  ;;  %v3247_v12 = vpop.f32.mrb[36].mxu0 }
 0x2df   : > { %v1638_v56 = vpop.xlane.xlu1 %1637  ;;  %v1111_v60 = vpop.f32.mrb[37].mxu0 }
 0x2e0   : > { %3491 = vpow2.f32 %v1794_v32  ;;  %v1730_v27 = vsub.f32 %v4420_v10, %v1638_v56  ;;  %v1731_v8 = vsub.f32 %v4422_v6, %v1638_v56  ;;  %3340 = vmatpush1.bf16.msra.mxu0 %v3339_v31  ;;  %v3342_v17 = vpack.c.bf16 %v3247_v12, %v1111_v60  ;;  %v3250_v5 = vpop.f32.mrb[38].mxu0 }
 0x2e1   : > { %3493 = vpow2.f32 %v1796_v57  ;;  %3341 = vmatprep.subr.bf16.mxu0 %v3776_v11 }
 0x2e2   : > { %v1798_v2 = vmul.f32 1.442695, %v1730_v27  ;;  %v1800_v49 = vmul.f32 1.442695, %v1731_v8  ;;  %v1121_v8 = vpop.f32.mrb[39].mxu0 }
 0x2e3   : > { %v1641_v18 = vpop.xlane.xlu1 %1640 }
 0x2e4   : > { %3495 = vpow2.f32 %v1798_v2  ;;  %v1732_v4 = vsub.f32 %v4426_v30, %v1641_v18  ;;  %v1733_v46 = vsub.f32 %v4428_v29, %v1641_v18  ;;  %3343 = vmatpush1.bf16.msra.mxu0 %v3342_v17  ;;  %v3253_v18 = vpop.f32.mrb[40].mxu0 }
 0x2e5   : > { %3497 = vpow2.f32 %v1800_v49  ;;  %v3345_v49 = vpack.c.bf16 %v3250_v5, %v1121_v8  ;;  %3344 = vmatprep.subr.bf16.mxu0 %v3776_v11  ;;  %v1131_v12 = vpop.f32.mrb[41].mxu0 }
 0x2e6   : > { %v4617_v10 = vpop.eup %3487  ;;  %v1802_v6 = vmul.f32 1.442695, %v1732_v4  ;;  %v1804_v57 = vmul.f32 1.442695, %v1733_v46  ;;  %v3348_v60 = vpack.c.bf16 %v3253_v18, %v1131_v12  ;;  %v3256_v17 = vpop.f32.mrb[42].mxu0 }
 0x2e7   : > { %v4619_v43 = vpop.eup %3489  ;;  %v1644_v23 = vpop.xlane.xlu0 %1643 }
 0x2e8   : > { %3499 = vpow2.f32 %v1802_v6  ;;  %v1734_v32 = vsub.f32 %v4432_v22, %v1644_v23  ;;  %v1735_v30 = vsub.f32 %v4434_v28, %v1644_v23  ;;  %v1918_v29 = vadd.f32 %v4619_v43, %v4617_v10  ;;  %3346 = vmatpush1.bf16.msra.mxu0 %v3345_v49  ;;  %v1141_v5 = vpop.f32.mrb[43].mxu0 }
 0x2e9   : > { %3501 = vpow2.f32 %v1804_v57  ;;  %3347 = vmatprep.subr.bf16.mxu0 %v3776_v11  ;;  %v3351_v8 = vpack.c.bf16 %v3256_v17, %v1141_v5  ;;  %v3259_v49 = vpop.f32.mrb[44].mxu0 }
 0x2ea   : > { %v4626_v56 = vpop.eup %3491  ;;  %v1806_v36 = vmul.f32 1.442695, %v1734_v32  ;;  %v1808_v27 = vmul.f32 1.442695, %v1735_v30  ;;  %1919 = vadd.xlane.f32.xlu1 %v1918_v29  ;;  %v1151_v18 = vpop.f32.mrb[45].mxu0 }
 0x2eb   : > { %v4628_v35 = vpop.eup %3493  ;;  %v1647_v2 = vpop.xlane.xlu1 %1646  ;;  %v3354_v12 = vpack.c.bf16 %v3259_v49, %v1151_v18 }
 0x2ec   : > { %3503 = vpow2.f32 %v1806_v36  ;;  %v1736_v22 = vsub.f32 %v4438_v38, %v1647_v2  ;;  %v1737_v28 = vsub.f32 %v4440_v41, %v1647_v2  ;;  %v1921_v3 = vadd.f32 %v4628_v35, %v4626_v56  ;;  %3349 = vmatpush1.bf16.msra.mxu0 %v3348_v60 }
 0x2ed   : > { %3505 = vpow2.f32 %v1808_v27  ;;  %3350 = vmatprep.subr.bf16.mxu0 %v3776_v11 }
 0x2ee   : > { %v4635_v31 = vpop.eup %3495  ;;  %v1810_v4 = vmul.f32 1.442695, %v1736_v22  ;;  %v1812_v46 = vmul.f32 1.442695, %v1737_v28  ;;  %1922 = vadd.xlane.f32.xlu1 %v1921_v3 }
 0x2ef   : > { %v4637_v6 = vpop.eup %3497  ;;  %v1650_v57 = vpop.xlane.xlu0 %1649 }
 0x2f0   : > { %3507 = vpow2.f32 %v1810_v4  ;;  %v1738_v38 = vsub.f32 %v4444_v44, %v1650_v57  ;;  %v1739_v41 = vsub.f32 %v4446_v47, %v1650_v57  ;;  %v1924_v23 = vadd.f32 %v4637_v6, %v4635_v31  ;;  %3352 = vmatpush1.bf16.msra.mxu0 %v3351_v8 }
 0x2f1   : > { %3509 = vpow2.f32 %v1812_v46  ;;  %3353 = vmatprep.subr.bf16.mxu0 %v3776_v11 }
 0x2f2   : > { %v4644_v32 = vpop.eup %3499  ;;  %v1814_v30 = vmul.f32 1.442695, %v1738_v38  ;;  %v1816_v29 = vmul.f32 1.442695, %v1739_v41  ;;  %1925 = vadd.xlane.f32.xlu1 %v1924_v23  ;;  %v3262_v23 = vpop.f32.mrb[46].mxu0 }
 0x2f3   : > { %v4646_v36 = vpop.eup %3501  ;;  %v1653_v27 = vpop.xlane.xlu1 %1652 }
 0x2f4   : > { %3511 = vpow2.f32 %v1814_v30  ;;  %v1740_v44 = vsub.f32 %v4450_v51, %v1653_v27  ;;  %v1741_v47 = vsub.f32 %v4452_v52, %v1653_v27  ;;  %v1927_v2 = vadd.f32 %v4646_v36, %v4644_v32  ;;  %3355 = vmatpush1.bf16.msra.mxu0 %v3354_v12 }
 0x2f5   : > { %3513 = vpow2.f32 %v1816_v29  ;;  %v1161_v29 = vpop.f32.mrb[47].mxu0  ;;  %3356 = vmatprep.subr.bf16.mxu0 %v3776_v11 }
 0x2f6   : > { %v4653_v22 = vpop.eup %3503  ;;  %v1818_v28 = vmul.f32 1.442695, %v1740_v44  ;;  %v1820_v3 = vmul.f32 1.442695, %v1741_v47  ;;  %1928 = vadd.xlane.f32.xlu1 %v1927_v2  ;;  %v3357_v27 = vpack.c.bf16 %v3262_v23, %v1161_v29  ;;  %v3265_v2 = vpop.f32.mrb[48].mxu0 }
 0x2f7   : > { %v4655_v4 = vpop.eup %3505  ;;  %v1656_v46 = vpop.xlane.xlu0 %1655 }
 0x2f8   : > { %3515 = vpow2.f32 %v1818_v28  ;;  %v1742_v51 = vsub.f32 %v4456_v58, %v1656_v46  ;;  %v1743_v52 = vsub.f32 %v4458_v0, %v1656_v46  ;;  %v1930_v57 = vadd.f32 %v4655_v4, %v4653_v22  ;;  %3358 = vmatpush1.bf16.msra.mxu0 %v3357_v27 }
 0x2f9   : > { %3517 = vpow2.f32 %v1820_v3  ;;  %v1171_v3 = vpop.f32.mrb[49].mxu0  ;;  %3359 = vmatprep.subr.bf16.mxu0 %v3776_v11 }
 0x2fa   : > { %v4662_v60 = vpop.eup %3507  ;;  %v1822_v38 = vmul.f32 1.442695, %v1742_v51  ;;  %v1824_v41 = vmul.f32 1.442695, %v1743_v52  ;;  %1931 = vadd.xlane.f32.xlu1 %v1930_v57  ;;  %v3360_v46 = vpack.c.bf16 %v3265_v2, %v1171_v3 }
 0x2fb   : > { %v4664_v17 = vpop.eup %3509  ;;  %v1659_v30 = vpop.xlane.xlu1 %1658 }
 0x2fc   : > { %3519 = vpow2.f32 %v1822_v38  ;;  %v1744_v58 = vsub.f32 %v4462_v16, %v1659_v30  ;;  %v1745_v0 = vsub.f32 %v4464_v7, %v1659_v30  ;;  %v1933_v5 = vadd.f32 %v4664_v17, %v4662_v60  ;;  %3361 = vmatpush1.bf16.msra.mxu0 %v3360_v46 }
 0x2fd   : > { %3521 = vpow2.f32 %v1824_v41 }
 0x2fe   : > { %v4671_v8 = vpop.eup %3511  ;;  %v1826_v44 = vmul.f32 1.442695, %v1744_v58  ;;  %v1828_v47 = vmul.f32 1.442695, %v1745_v0  ;;  %1934 = vadd.xlane.f32.xlu1 %v1933_v5 }
 0x2ff   : > { %v4673_v49 = vpop.eup %3513  ;;  %v1662_v28 = vpop.xlane.xlu0 %1661 }
 0x300   : > { %3523 = vpow2.f32 %v1826_v44  ;;  %v1746_v16 = vsub.f32 %v4468_v62, %v1662_v28  ;;  %v1747_v7 = vsub.f32 %v4470_v33, %v1662_v28  ;;  %v1936_v18 = vadd.f32 %v4673_v49, %v4671_v8 }
 0x301   : > { %3525 = vpow2.f32 %v1828_v47 }
 0x302   : > { %v4680_v12 = vpop.eup %3515  ;;  %v1830_v51 = vmul.f32 1.442695, %v1746_v16  ;;  %v1832_v52 = vmul.f32 1.442695, %v1747_v7  ;;  %1937 = vadd.xlane.f32.xlu1 %v1936_v18 }
 0x303   : > { %v4682_v57 = vpop.eup %3517  ;;  %v1665_v38 = vpop.xlane.xlu1 %1664 }
 0x304   : > { %3527 = vpow2.f32 %v1830_v51  ;;  %v1748_v62 = vsub.f32 %v4474_v34, %v1665_v38  ;;  %v1749_v33 = vsub.f32 %v4476_v37, %v1665_v38  ;;  %v1939_v41 = vadd.f32 %v4682_v57, %v4680_v12 }
 0x305   : > { %3529 = vpow2.f32 %v1832_v52 }
 0x306   : > { %v4688_v11 = vpop.eup %3519  ;;  %v1834_v23 = vmul.f32 1.442695, %v1748_v62  ;;  %v1836_v30 = vmul.f32 1.442695, %v1749_v33  ;;  %1940 = vadd.xlane.f32.xlu1 %v1939_v41 }
 0x307   : > { %v4690_v29 = vpop.eup %3521  ;;  %v1668_v58 = vpop.xlane.xlu0 %1667 }
 0x308   : > { %3531 = vpow2.f32 %v1834_v23  ;;  %v1750_v0 = vsub.f32 %v4480_v42, %v1668_v58  ;;  %v1751_v5 = vsub.f32 %v4482_v40, %v1668_v58  ;;  %v1942_v34 = vadd.f32 %v4690_v29, %v4688_v11 }
 0x309   : > { %3533 = vpow2.f32 %v1836_v30 }
 0x30a   : > { %v4696_v37 = vpop.eup %3523  ;;  %v1838_v27 = vmul.f32 1.442695, %v1750_v0  ;;  %v1840_v44 = vmul.f32 1.442695, %v1751_v5  ;;  %1943 = vadd.xlane.f32.xlu1 %v1942_v34 }
 0x30b   : > { %v4698_v47 = vpop.eup %3525  ;;  %v1671_v2 = vpop.xlane.xlu1 %1670 }
 0x30c   : > { %3535 = vpow2.f32 %v1838_v27  ;;  %v1752_v28 = vsub.f32 %v4486_v45, %v1671_v2  ;;  %v1753_v3 = vsub.f32 %v4488_v50, %v1671_v2  ;;  %v1945_v42 = vadd.f32 %v4698_v47, %v4696_v37 }
 0x30d   : > { %3537 = vpow2.f32 %v1840_v44 }
 0x30e   : > { %v4704_v40 = vpop.eup %3527  ;;  %v1842_v16 = vmul.f32 1.442695, %v1752_v28  ;;  %v1844_v7 = vmul.f32 1.442695, %v1753_v3  ;;  %1946 = vadd.xlane.f32.xlu1 %v1945_v42 }
 0x30f   : > { %v4706_v18 = vpop.eup %3529  ;;  %v1674_v46 = vpop.xlane.xlu0 %1673 }
 0x310   : > { %3539 = vpow2.f32 %v1842_v16  ;;  %v1754_v51 = vsub.f32 %v4492_v54, %v1674_v46  ;;  %v1755_v52 = vsub.f32 %v4494_v9, %v1674_v46  ;;  %v1948_v45 = vadd.f32 %v4706_v18, %v4704_v40 }
 0x311   : > { %3541 = vpow2.f32 %v1844_v7 }
 0x312   : > { %v4712_v50 = vpop.eup %3531  ;;  %v1846_v38 = vmul.f32 1.442695, %v1754_v51  ;;  %v1848_v62 = vmul.f32 1.442695, %v1755_v52  ;;  %1949 = vadd.xlane.f32.xlu0 %v1948_v45 }
 0x313   : > { %v4714_v33 = vpop.eup %3533  ;;  %v1677_v41 = vpop.xlane.xlu1 %1676 }
 0x314   : > { %3543 = vpow2.f32 %v1846_v38  ;;  %v1756_v23 = vsub.f32 %v4498_v13, %v1677_v41  ;;  %v1757_v30 = vsub.f32 %v4500_v15, %v1677_v41  ;;  %v1951_v54 = vadd.f32 %v4714_v33, %v4712_v50 }
 0x315   : > { %3545 = vpow2.f32 %v1848_v62 }
 0x316   : > { %v4720_v9 = vpop.eup %3535  ;;  %v1850_v58 = vmul.f32 1.442695, %v1756_v23  ;;  %v1852_v0 = vmul.f32 1.442695, %v1757_v30  ;;  %1952 = vadd.xlane.f32.xlu1 %v1951_v54 }
 0x317   : > { %v4722_v5 = vpop.eup %3537  ;;  %v1680_v34 = vpop.xlane.xlu0 %1679 }
 0x318   : > { %3547 = vpow2.f32 %v1850_v58  ;;  %v1758_v27 = vsub.f32 %v4504_v19, %v1680_v34  ;;  %v1759_v44 = vsub.f32 %v4506_v21, %v1680_v34  ;;  %v1954_v13 = vadd.f32 %v4722_v5, %v4720_v9 }
 0x319   : > { %3549 = vpow2.f32 %v1852_v0 }
 0x31a   : > { %v4728_v15 = vpop.eup %3539  ;;  %v1854_v2 = vmul.f32 1.442695, %v1758_v27  ;;  %v1856_v28 = vmul.f32 1.442695, %v1759_v44  ;;  %1955 = vadd.xlane.f32.xlu0 %v1954_v13 }
 0x31b   : > { %v4730_v3 = vpop.eup %3541  ;;  %v1683_v42 = vpop.xlane.xlu1 %1682 }
 0x31c   : > { %3551 = vpow2.f32 %v1854_v2  ;;  %v1760_v16 = vsub.f32 %v4510_v25, %v1683_v42  ;;  %v1761_v7 = vsub.f32 %v4512_v26, %v1683_v42  ;;  %v1957_v19 = vadd.f32 %v4730_v3, %v4728_v15 }
 0x31d   : > { %3553 = vpow2.f32 %v1856_v28 }
 0x31e   : > { %v4736_v21 = vpop.eup %3543  ;;  %v1858_v46 = vmul.f32 1.442695, %v1760_v16  ;;  %v1860_v51 = vmul.f32 1.442695, %v1761_v7  ;;  %1958 = vadd.xlane.f32.xlu1 %v1957_v19 }
 0x31f   : > { %v4738_v52 = vpop.eup %3545  ;;  %v1686_v45 = vpop.xlane.xlu0 %1685 }
 0x320   : > { %3555 = vpow2.f32 %v1858_v46  ;;  %v1762_v38 = vsub.f32 %v4516_v53, %v1686_v45  ;;  %v1763_v62 = vsub.f32 %v4518_v55, %v1686_v45  ;;  %v1960_v25 = vadd.f32 %v4738_v52, %v4736_v21 }
 0x321   : > { %3557 = vpow2.f32 %v1860_v51 }
 0x322   : > { %v4744_v26 = vpop.eup %3547  ;;  %v1862_v41 = vmul.f32 1.442695, %v1762_v38  ;;  %v1864_v23 = vmul.f32 1.442695, %v1763_v62  ;;  %1961 = vadd.xlane.f32.xlu0 %v1960_v25 }
 0x323   : > { %v4746_v30 = vpop.eup %3549  ;;  %v1689_v54 = vpop.xlane.xlu1 %1688 }
 0x324   : > { %3559 = vpow2.f32 %v1862_v41  ;;  %v1764_v58 = vsub.f32 %v4522_v63, %v1689_v54  ;;  %v1765_v0 = vsub.f32 %v4524_v24, %v1689_v54  ;;  %v1963_v53 = vadd.f32 %v4746_v30, %v4744_v26 }
 0x325   : > { %3561 = vpow2.f32 %v1864_v23 }
 0x326   : > { %v4752_v55 = vpop.eup %3551  ;;  %v1866_v34 = vmul.f32 1.442695, %v1764_v58  ;;  %v1868_v27 = vmul.f32 1.442695, %v1765_v0  ;;  %1964 = vadd.xlane.f32.xlu1 %v1963_v53 }
 0x327   : > { %v4754_v44 = vpop.eup %3553  ;;  %v1692_v13 = vpop.xlane.xlu0 %1691 }
 0x328   : > { %3563 = vpow2.f32 %v1866_v34  ;;  %v1766_v2 = vsub.f32 %v4528_v20, %v1692_v13  ;;  %v1767_v28 = vsub.f32 %v4530_v39, %v1692_v13  ;;  %v1966_v63 = vadd.f32 %v4754_v44, %v4752_v55 }
 0x329   : > { %3565 = vpow2.f32 %v1868_v27  ;;  %v5162_v27 = vld [vmem:[#allocation21_spill] sm:$0xff] }
 0x32a   : > { %v4760_v24 = vpop.eup %3555  ;;  %v1870_v42 = vmul.f32 1.442695, %v1766_v2  ;;  %v1872_v16 = vmul.f32 1.442695, %v1767_v28  ;;  %1967 = vadd.xlane.f32.xlu0 %v1966_v63 }
 0x32b   : > { %v4762_v7 = vpop.eup %3557  ;;  %v1695_v19 = vpop.xlane.xlu1 %1694 }
 0x32c   : > { %3567 = vpow2.f32 %v1870_v42  ;;  %v1768_v46 = vsub.f32 %v4534_v61, %v1695_v19  ;;  %v1769_v51 = vsub.f32 %v4536_v1, %v1695_v19  ;;  %v1969_v20 = vadd.f32 %v4762_v7, %v4760_v24 }
 0x32d   : > { %3569 = vpow2.f32 %v1872_v16  ;;  %v5163_v16 = vld [vmem:[#allocation22_spill] sm:$0xff] }
 0x32e   : > { %v4768_v39 = vpop.eup %3559  ;;  %v1874_v45 = vmul.f32 1.442695, %v1768_v46  ;;  %v1876_v38 = vmul.f32 1.442695, %v1769_v51  ;;  %1970 = vadd.xlane.f32.xlu1 %v1969_v20  ;;  %v5164_v46 = vld [vmem:[#allocation23_spill] sm:$0xff] }
 0x32f   : > { %v4770_v62 = vpop.eup %3561  ;;  %v1698_v25 = vpop.xlane.xlu0 %1697 }
 0x330   : > { %3571 = vpow2.f32 %v1874_v45  ;;  %v1770_v41 = vsub.f32 %v4540_v14, %v1698_v25  ;;  %v1771_v23 = vsub.f32 %v4542_v59, %v1698_v25  ;;  %v1972_v61 = vadd.f32 %v4770_v62, %v4768_v39 }
 0x331   : > { %3573 = vpow2.f32 %v1876_v38 }
 0x332   : > { %v4776_v1 = vpop.eup %3563  ;;  %v1878_v54 = vmul.f32 1.442695, %v1770_v41  ;;  %v1880_v58 = vmul.f32 1.442695, %v1771_v23  ;;  %1973 = vadd.xlane.f32.xlu0 %v1972_v61  ;;  %v5165_v23 = vld [vmem:[#allocation24_spill] sm:$0xff] }
 0x333   : > { %v4778_v0 = vpop.eup %3565  ;;  %v1701_v53 = vpop.xlane.xlu0 %1700 }
 0x334   : > { %3575 = vpow2.f32 %v1878_v54  ;;  %v1772_v34 = vsub.f32 %v4546_v48, %v1701_v53  ;;  %v1773_v13 = vsub.f32 %v5162_v27, %v1701_v53  ;;  %v1975_v14 = vadd.f32 %v4778_v0, %v4776_v1  ;;  %v5166_v54 = vld [vmem:[#allocation25_spill] sm:$0xff] }
 0x335   : > { %3577 = vpow2.f32 %v1880_v58 }
 0x336   : > { %v4784_v59 = vpop.eup %3567  ;;  %v1882_v2 = vmul.f32 1.442695, %v1772_v34  ;;  %v1884_v28 = vmul.f32 1.442695, %v1773_v13  ;;  %1976 = vadd.xlane.f32.xlu1 %v1975_v14 }
 0x337   : > { %v4786_v63 = vpop.eup %3569  ;;  %v1704_v42 = vpop.xlane.xlu0 %1703 }
 0x338   : > { %3579 = vpow2.f32 %v1882_v2  ;;  %v1774_v19 = vsub.f32 %v5163_v16, %v1704_v42  ;;  %v1775_v51 = vsub.f32 %v5164_v46, %v1704_v42  ;;  %v1978_v48 = vadd.f32 %v4786_v63, %v4784_v59  ;;  %v5168_v16 = vld [vmem:[#allocation7_spill] sm:$0xff] }
 0x339   : > { %3581 = vpow2.f32 %v1884_v28  ;;  %v5167_v28 = vld [vmem:[#allocation26_spill] sm:$0xff] }
 0x33a   : > { %v4792_v20 = vpop.eup %3571  ;;  %v1886_v45 = vmul.f32 1.442695, %v1774_v19  ;;  %v1888_v38 = vmul.f32 1.442695, %v1775_v51  ;;  %1979 = vadd.xlane.f32.xlu0 %v1978_v48 }
 0x33b   : > { %v4794_v25 = vpop.eup %3573  ;;  %v1707_v41 = vpop.xlane.xlu0 %1706 }
 0x33c   : > { %3583 = vpow2.f32 %v1886_v45  ;;  %v1776_v61 = vsub.f32 %v5165_v23, %v1707_v41  ;;  %v1777_v58 = vsub.f32 %v5166_v54, %v1707_v41  ;;  %v1981_v53 = vadd.f32 %v4794_v25, %v4792_v20  ;;  %v5171_v23 = vld [vmem:[#allocation8_spill] sm:$0xff]  ;;  %v5172_v54 = vld [vmem:[#allocation9_spill] sm:$0xff] }
 0x33d   : > { %3585 = vpow2.f32 %v1888_v38 }
 0x33e   : > { %v4800_v34 = vpop.eup %3575  ;;  %v1890_v27 = vmul.f32 1.442695, %v1776_v61  ;;  %v1892_v13 = vmul.f32 1.442695, %v1777_v58  ;;  %1982 = vadd.xlane.f32.xlu1 %v1981_v53 }
 0x33f   : > { %v4802_v14 = vpop.eup %3577  ;;  %v1710_v2 = vpop.xlane.xlu0 %1709 }
 0x340   : > { %3587 = vpow2.f32 %v1890_v27  ;;  %v1778_v42 = vsub.f32 %v5167_v28, %v1710_v2  ;;  %v1779_v19 = vsub.f32 %v5168_v16, %v1710_v2  ;;  %v1984_v46 = vadd.f32 %v4802_v14, %v4800_v34  ;;  %v5175_v16 = vld [vmem:[#allocation10_spill] sm:$0xff] }
 0x341   : > { %3589 = vpow2.f32 %v1892_v13 }
 0x342   : > { %v4808_v51 = vpop.eup %3579  ;;  %v1894_v48 = vmul.f32 1.442695, %v1778_v42  ;;  %v1896_v45 = vmul.f32 1.442695, %v1779_v19  ;;  %1985 = vadd.xlane.f32.xlu0 %v1984_v46  ;;  %v5176_v46 = vld [vmem:[#allocation11_spill] sm:$0xff] }
 0x343   : > { %5169 = vst [vmem:[#allocation18_spill] sm:$0xff] %v4808_v51  ;;  %v4810_v38 = vpop.eup %3581  ;;  %v1713_v41 = vpop.xlane.xlu0 %1712 }
 0x344   : > { %5170 = vst [vmem:[#allocation19_spill] sm:$0xff] %v4810_v38  ;;  %3591 = vpow2.f32 %v1894_v48  ;;  %v1780_v61 = vsub.f32 %v5171_v23, %v1713_v41  ;;  %v1781_v58 = vsub.f32 %v5172_v54, %v1713_v41  ;;  %v1987_v53 = vadd.f32 %v4810_v38, %v4808_v51 }
 0x345   : > { %3593 = vpow2.f32 %v1896_v45 }
 0x346   : > { %v4816_v27 = vpop.eup %3583  ;;  %v1898_v13 = vmul.f32 1.442695, %v1780_v61  ;;  %v1900_v2 = vmul.f32 1.442695, %v1781_v58  ;;  %1988 = vadd.xlane.f32.xlu1 %v1987_v53  ;;  %v5179_v53 = vld [vmem:[#allocation12_spill] sm:$0xff] }
 0x347   : > { %5173 = vst [vmem:[#allocation20_spill] sm:$0xff] %v4816_v27  ;;  %v4818_v28 = vpop.eup %3585  ;;  %v1716_v42 = vpop.xlane.xlu0 %1715 }
 0x348   : > { %5174 = vst [vmem:[#allocation21_spill] sm:$0xff] %v4818_v28  ;;  %3595 = vpow2.f32 %v1898_v13  ;;  %v1782_v19 = vsub.f32 %v5175_v16, %v1716_v42  ;;  %v1783_v48 = vsub.f32 %v5176_v46, %v1716_v42  ;;  %v1990_v41 = vadd.f32 %v4818_v28, %v4816_v27  ;;  %v5180_v13 = vld [vmem:[#allocation13_spill] sm:$0xff] }
 0x349   : > { %3597 = vpow2.f32 %v1900_v2 }
 0x34a   : > { %v4824_v23 = vpop.eup %3587  ;;  %v1902_v45 = vmul.f32 1.442695, %v1782_v19  ;;  %v1904_v54 = vmul.f32 1.442695, %v1783_v48  ;;  %1991 = vadd.xlane.f32.xlu0 %v1990_v41  ;;  %v5181_v41 = vld [vmem:[#allocation14_spill] sm:$0xff] }
 0x34b   : > { %5177 = vst [vmem:[#allocation22_spill] sm:$0xff] %v4824_v23  ;;  %v4826_v61 = vpop.eup %3589  ;;  %v1719_v58 = vpop.xlane.xlu0 %1718 }
 0x34c   : > { %5178 = vst [vmem:[#allocation23_spill] sm:$0xff] %v4826_v61  ;;  %3599 = vpow2.f32 %v1902_v45  ;;  %v1784_v51 = vsub.f32 %v5179_v53, %v1719_v58  ;;  %v1785_v38 = vsub.f32 %v5180_v13, %v1719_v58  ;;  %v1993_v42 = vadd.f32 %v4826_v61, %v4824_v23  ;;  %v5182_v45 = vld [vmem:[#allocation15_spill] sm:$0xff] }
 0x34d   : > { %3601 = vpow2.f32 %v1904_v54 }
 0x34e   : > { %v4832_v16 = vpop.eup %3591  ;;  %v1906_v2 = vmul.f32 1.442695, %v1784_v51  ;;  %v1908_v46 = vmul.f32 1.442695, %v1785_v38  ;;  %1994 = vadd.xlane.f32.xlu1 %v1993_v42  ;;  %v5183_v42 = vld [vmem:[#allocation16_spill] sm:$0xff] }
 0x34f   : > { %v4834_v19 = vpop.eup %3593  ;;  %v1722_v48 = vpop.xlane.xlu0 %1721 }
 0x350   : > { %3603 = vpow2.f32 %v1906_v2  ;;  %v1786_v27 = vsub.f32 %v5181_v41, %v1722_v48  ;;  %v1787_v28 = vsub.f32 %v5182_v45, %v1722_v48  ;;  %v1996_v58 = vadd.f32 %v4834_v19, %v4832_v16  ;;  %v5184_v2 = vld [vmem:[#allocation17_spill] sm:$0xff] }
 0x351   : > { %3605 = vpow2.f32 %v1908_v46 }
 0x352   : > { %v4840_v53 = vpop.eup %3595  ;;  %v1910_v54 = vmul.f32 1.442695, %v1786_v27  ;;  %v1912_v13 = vmul.f32 1.442695, %v1787_v28  ;;  %1997 = vadd.xlane.f32.xlu0 %v1996_v58 }
 0x353   : > { %v4842_v51 = vpop.eup %3597  ;;  %v1725_v38 = vpop.xlane.xlu0 %1724 }
 0x354   : > { %3607 = vpow2.f32 %v1910_v54  ;;  %v1788_v23 = vsub.f32 %v5183_v42, %v1725_v38  ;;  %v1789_v61 = vsub.f32 %v5184_v2, %v1725_v38  ;;  %v1999_v48 = vadd.f32 %v4842_v51, %v4840_v53 }
 0x355   : > { %3609 = vpow2.f32 %v1912_v13 }
 0x356   : > { %v4848_v41 = vpop.eup %3599  ;;  %v1914_v46 = vmul.f32 1.442695, %v1788_v23  ;;  %v1916_v45 = vmul.f32 1.442695, %v1789_v61  ;;  %2000 = vadd.xlane.f32.xlu1 %v1999_v48 }
 0x357   : > { %v4850_v27 = vpop.eup %3601 }
 0x358   : > { %3611 = vpow2.f32 %v1914_v46  ;;  %v2002_v28 = vadd.f32 %v4850_v27, %v4848_v41 }
 0x359   : > { %3613 = vpow2.f32 %v1916_v45 }
 0x35a   : > { %v4854_v58 = vpop.eup %3603  ;;  %2003 = vadd.xlane.f32.xlu0 %v2002_v28 }
 0x35b   : > { %5185 = vst [vmem:[#allocation24_spill] sm:$0xff] %v4854_v58  ;;  %v4856_v54 = vpop.eup %3605 }
 0x35c   : > { %5186 = vst [vmem:[#allocation25_spill] sm:$0xff] %v4856_v54  ;;  %v2005_v13 = vadd.f32 %v4856_v54, %v4854_v58 }
 0x35e   : > { %v4860_v38 = vpop.eup %3607  ;;  %2006 = vadd.xlane.f32.xlu1 %v2005_v13 }
 0x35f   : > { %5187 = vst [vmem:[#allocation26_spill] sm:$0xff] %v4860_v38  ;;  %v4862_v23 = vpop.eup %3609 }
 0x360   : > { %5188 = vst [vmem:[#allocation7_spill] sm:$0xff] %v4862_v23  ;;  %v2008_v61 = vadd.f32 %v4862_v23, %v4860_v38 }
 0x362   : > { %v4866_v42 = vpop.eup %3611  ;;  %2009 = vadd.xlane.f32.xlu0 %v2008_v61 }
 0x363   : > { %5189 = vst [vmem:[#allocation8_spill] sm:$0xff] %v4866_v42  ;;  %v4868_v2 = vpop.eup %3613 }
 0x364   : > { %v2011_v48 = vadd.f32 %v4868_v2, %v4866_v42 }
 0x366   : > { %2012 = vadd.xlane.f32.xlu1 %v2011_v48 }
 0x377   : > { %v1920_v46 = vpop.xlane.xlu1 %1919 }
 0x378   : > { %3615 = vrcp.f32 %v1920_v46 }
 0x37b   : > { %v1923_v45 = vpop.xlane.xlu1 %1922 }
 0x37c   : > { %3617 = vrcp.f32 %v1923_v45 }
 0x37f   : > { %v1926_v28 = vpop.xlane.xlu1 %1925 }
 0x380   : > { %3619 = vrcp.f32 %v1926_v28 }
 0x382   : > { %v3616_v13 = vpop.eup %3615 }
 0x383   : > { %v2015_v58 = vmul.f32 %v3616_v13, %v4617_v10  ;;  %v1929_v54 = vpop.xlane.xlu1 %1928  ;;  %v2016_v38 = vmul.f32 %v3616_v13, %v4619_v43 }
 0x384   : > { %3621 = vrcp.f32 %v1929_v54 }
 0x385   : > { %2174 = vmatprep.mubr.f32.mxu0 %v2016_v38 }
 0x386   : > { %v3618_v61 = vpop.eup %3617  ;;  %2175 = vmatmul.mubr.f32.vlgmr.msra.gmra.mrb[50].mxu0 %v2015_v58 }
 0x387   : > { %v1932_v23 = vpop.xlane.xlu1 %1931  ;;  %v2019_v42 = vmul.f32 %v3618_v61, %v4628_v35  ;;  %v2018_v48 = vmul.f32 %v3618_v61, %v4626_v56 }
 0x388   : > { %3623 = vrcp.f32 %v1932_v23 }
 0x389   : > { %2179 = vmatprep.mubr.f32.mxu0 %v2019_v42 }
 0x38a   : > { %v3620_v46 = vpop.eup %3619  ;;  %2180 = vmatmul.mubr.f32.gmra.mrb[52].mxu0 %v2018_v48 }
 0x38b   : > { %v1935_v45 = vpop.xlane.xlu1 %1934  ;;  %v2022_v28 = vmul.f32 %v3620_v46, %v4637_v6  ;;  %v2021_v10 = vmul.f32 %v3620_v46, %v4635_v31 }
 0x38c   : > { %3625 = vrcp.f32 %v1935_v45 }
 0x38d   : > { %2184 = vmatprep.mubr.f32.mxu0 %v2022_v28 }
 0x38e   : > { %v3622_v43 = vpop.eup %3621  ;;  %2185 = vmatmul.mubr.f32.gmra.mrb[54].mxu0 %v2021_v10 }
 0x38f   : > { %v1938_v54 = vpop.xlane.xlu1 %1937  ;;  %v2025_v58 = vmul.f32 %v3622_v43, %v4646_v36  ;;  %v2024_v35 = vmul.f32 %v3622_v43, %v4644_v32 }
 0x390   : > { %3627 = vrcp.f32 %v1938_v54 }
 0x391   : > { %2189 = vmatprep.mubr.f32.mxu0 %v2025_v58 }
 0x392   : > { %v3624_v56 = vpop.eup %3623  ;;  %2190 = vmatmul.mubr.f32.gmra.mrb[56].mxu0 %v2024_v35 }
 0x393   : > { %v1941_v38 = vpop.xlane.xlu1 %1940  ;;  %v2028_v23 = vmul.f32 %v3624_v56, %v4655_v4  ;;  %v2027_v6 = vmul.f32 %v3624_v56, %v4653_v22 }
 0x394   : > { %3629 = vrcp.f32 %v1941_v38 }
 0x395   : > { %2194 = vmatprep.mubr.f32.mxu0 %v2028_v23 }
 0x396   : > { %v3626_v31 = vpop.eup %3625  ;;  %2195 = vmatmul.mubr.f32.gmra.mrb[58].mxu0 %v2027_v6 }
 0x397   : > { %v1944_v42 = vpop.xlane.xlu1 %1943  ;;  %v2031_v13 = vmul.f32 %v3626_v31, %v4664_v17  ;;  %v2030_v36 = vmul.f32 %v3626_v31, %v4662_v60 }
 0x398   : > { %3631 = vrcp.f32 %v1944_v42 }
 0x399   : > { %2199 = vmatprep.mubr.f32.mxu0 %v2031_v13 }
 0x39a   : > { %v3628_v32 = vpop.eup %3627  ;;  %2200 = vmatmul.mubr.f32.gmra.mrb[60].mxu0 %v2030_v36 }
 0x39b   : > { %v1947_v61 = vpop.xlane.xlu1 %1946  ;;  %v2034_v48 = vmul.f32 %v3628_v32, %v4673_v49  ;;  %v2033_v4 = vmul.f32 %v3628_v32, %v4671_v8 }
 0x39c   : > { %3633 = vrcp.f32 %v1947_v61 }
 0x39d   : > { %2204 = vmatprep.mubr.f32.mxu0 %v2034_v48 }
 0x39e   : > { %v3630_v22 = vpop.eup %3629  ;;  %2205 = vmatmul.mubr.f32.gmra.mrb[62].mxu0 %v2033_v4 }
 0x39f   : > { %v1950_v46 = vpop.xlane.xlu0 %1949  ;;  %v2037_v45 = vmul.f32 %v3630_v22, %v4682_v57  ;;  %v2036_v17 = vmul.f32 %v3630_v22, %v4680_v12 }
 0x3a0   : > { %3635 = vrcp.f32 %v1950_v46 }
 0x3a1   : > { %2209 = vmatprep.mubr.f32.mxu0 %v2037_v45 }
 0x3a2   : > { %v3632_v60 = vpop.eup %3631  ;;  %2210 = vmatmul.mubr.f32.gmra.mrb[64].mxu0 %v2036_v17 }
 0x3a3   : > { %v1953_v28 = vpop.xlane.xlu1 %1952  ;;  %v2040_v10 = vmul.f32 %v3632_v60, %v4690_v29  ;;  %v2039_v49 = vmul.f32 %v3632_v60, %v4688_v11 }
 0x3a4   : > { %3637 = vrcp.f32 %v1953_v28 }
 0x3a5   : > { %2214 = vmatprep.mubr.f32.mxu0 %v2040_v10 }
 0x3a6   : > { %v3634_v8 = vpop.eup %3633  ;;  %2215 = vmatmul.mubr.f32.gmra.mrb[66].mxu0 %v2039_v49 }
 0x3a7   : > { %v1956_v43 = vpop.xlane.xlu0 %1955  ;;  %v2043_v54 = vmul.f32 %v3634_v8, %v4698_v47  ;;  %v2042_v57 = vmul.f32 %v3634_v8, %v4696_v37 }
 0x3a8   : > { %3639 = vrcp.f32 %v1956_v43 }
 0x3a9   : > { %2219 = vmatprep.mubr.f32.mxu0 %v2043_v54 }
 0x3aa   : > { %v3636_v12 = vpop.eup %3635  ;;  %2220 = vmatmul.mubr.f32.gmra.mrb[68].mxu0 %v2042_v57 }
 0x3ab   : > { %v1959_v58 = vpop.xlane.xlu1 %1958  ;;  %v2046_v35 = vmul.f32 %v3636_v12, %v4706_v18  ;;  %v2045_v29 = vmul.f32 %v3636_v12, %v4704_v40 }
 0x3ac   : > { %3641 = vrcp.f32 %v1959_v58  ;;  %v5190_v58 = vld [vmem:[#allocation19_spill] sm:$0xff] }
 0x3ad   : > { %2224 = vmatprep.mubr.f32.mxu0 %v2046_v35 }
 0x3ae   : > { %v3638_v11 = vpop.eup %3637  ;;  %2225 = vmatmul.mubr.f32.gmra.mrb[70].mxu0 %v2045_v29  ;;  %v5191_v29 = vld [vmem:[#allocation18_spill] sm:$0xff] }
 0x3af   : > { %v1962_v56 = vpop.xlane.xlu0 %1961  ;;  %v2049_v38 = vmul.f32 %v3638_v11, %v4714_v33  ;;  %v2048_v47 = vmul.f32 %v3638_v11, %v4712_v50 }
 0x3b0   : > { %3643 = vrcp.f32 %v1962_v56  ;;  %v5192_v56 = vld [vmem:[#allocation21_spill] sm:$0xff] }
 0x3b1   : > { %2229 = vmatprep.mubr.f32.mxu0 %v2049_v38 }
 0x3b2   : > { %v3640_v37 = vpop.eup %3639  ;;  %2230 = vmatmul.mubr.f32.gmra.mrb[72].mxu0 %v2048_v47  ;;  %v5193_v47 = vld [vmem:[#allocation20_spill] sm:$0xff] }
 0x3b3   : > { %v1965_v23 = vpop.xlane.xlu1 %1964  ;;  %v2052_v6 = vmul.f32 %v3640_v37, %v4722_v5  ;;  %v2051_v18 = vmul.f32 %v3640_v37, %v4720_v9 }
 0x3b4   : > { %3645 = vrcp.f32 %v1965_v23  ;;  %v5194_v23 = vld [vmem:[#allocation23_spill] sm:$0xff] }
 0x3b5   : > { %2234 = vmatprep.mubr.f32.mxu0 %v2052_v6 }
 0x3b6   : > { %v3642_v40 = vpop.eup %3641  ;;  %2235 = vmatmul.mubr.f32.gmra.mrb[74].mxu0 %v2051_v18  ;;  %v5195_v18 = vld [vmem:[#allocation22_spill] sm:$0xff] }
 0x3b7   : > { %v1968_v31 = vpop.xlane.xlu0 %1967  ;;  %v2055_v42 = vmul.f32 %v3642_v40, %v4730_v3  ;;  %v2054_v33 = vmul.f32 %v3642_v40, %v4728_v15 }
 0x3b8   : > { %3647 = vrcp.f32 %v1968_v31 }
 0x3b9   : > { %2239 = vmatprep.mubr.f32.mxu0 %v2055_v42 }
 0x3ba   : > { %v3644_v50 = vpop.eup %3643  ;;  %2240 = vmatmul.mubr.f32.gmra.mrb[76].mxu0 %v2054_v33 }
 0x3bb   : > { %v1971_v13 = vpop.xlane.xlu1 %1970  ;;  %v2058_v36 = vmul.f32 %v3644_v50, %v4738_v52  ;;  %v2057_v5 = vmul.f32 %v3644_v50, %v4736_v21 }
 0x3bc   : > { %3649 = vrcp.f32 %v1971_v13 }
 0x3bd   : > { %2244 = vmatprep.mubr.f32.mxu0 %v2058_v36 }
 0x3be   : > { %v3646_v9 = vpop.eup %3645  ;;  %2245 = vmatmul.mubr.f32.gmra.mrb[78].mxu0 %v2057_v5 }
 0x3bf   : > { %v1974_v32 = vpop.xlane.xlu0 %1973  ;;  %v2061_v61 = vmul.f32 %v3646_v9, %v4746_v30  ;;  %v2060_v3 = vmul.f32 %v3646_v9, %v4744_v26 }
 0x3c0   : > { %3651 = vrcp.f32 %v1974_v32 }
 0x3c1   : > { %2249 = vmatprep.mubr.f32.mxu0 %v2061_v61 }
 0x3c2   : > { %v3648_v15 = vpop.eup %3647  ;;  %2250 = vmatmul.mubr.f32.gmra.mrb[80].mxu0 %v2060_v3 }
 0x3c3   : > { %v1977_v48 = vpop.xlane.xlu1 %1976  ;;  %v2064_v4 = vmul.f32 %v3648_v15, %v4754_v44  ;;  %v2063_v52 = vmul.f32 %v3648_v15, %v4752_v55  ;;  %v5196_v15 = vld [vmem:[#allocation25_spill] sm:$0xff] }
 0x3c4   : > { %3653 = vrcp.f32 %v1977_v48 }
 0x3c5   : > { %2254 = vmatprep.mubr.f32.mxu0 %v2064_v4  ;;  %v5197_v4 = vld [vmem:[#allocation24_spill] sm:$0xff] }
 0x3c6   : > { %v3650_v21 = vpop.eup %3649  ;;  %2255 = vmatmul.mubr.f32.gmra.mrb[82].mxu0 %v2063_v52  ;;  %v5198_v52 = vld [vmem:[#allocation7_spill] sm:$0xff] }
 0x3c7   : > { %v1980_v22 = vpop.xlane.xlu0 %1979  ;;  %v2067_v46 = vmul.f32 %v3650_v21, %v4762_v7  ;;  %v2066_v30 = vmul.f32 %v3650_v21, %v4760_v24 }
 0x3c8   : > { %3655 = vrcp.f32 %v1980_v22  ;;  %v5199_v22 = vld [vmem:[#allocation26_spill] sm:$0xff] }
 0x3c9   : > { %2259 = vmatprep.mubr.f32.mxu0 %v2067_v46 }
 0x3ca   : > { %v3652_v26 = vpop.eup %3651  ;;  %2260 = vmatmul.mubr.f32.gmra.mrb[84].mxu0 %v2066_v30  ;;  %v5200_v30 = vld [vmem:[#allocation8_spill] sm:$0xff] }
 0x3cb   : > { %v1983_v45 = vpop.xlane.xlu1 %1982  ;;  %v2070_v17 = vmul.f32 %v3652_v26, %v4770_v62  ;;  %v2069_v44 = vmul.f32 %v3652_v26, %v4768_v39 }
 0x3cc   : > { %3657 = vrcp.f32 %v1983_v45 }
 0x3cd   : > { %2264 = vmatprep.mubr.f32.mxu0 %v2070_v17 }
 0x3ce   : > { %v3654_v55 = vpop.eup %3653  ;;  %2265 = vmatmul.mubr.f32.gmra.mrb[86].mxu0 %v2069_v44  ;;  %v4940_v44 = vld [vmem:[%s329_s12] sm:$0xf] }
 0x3cf   : > { %v1986_v60 = vpop.xlane.xlu0 %1985  ;;  %v2073_v28 = vmul.f32 %v3654_v55, %v4778_v0  ;;  %v2072_v7 = vmul.f32 %v3654_v55, %v4776_v1  ;;  %3114 = vmatprep.mubr.msk.f32.mxu1 %vm1180_vm2, %v4940_v44 }
 0x3d0   : > { %3659 = vrcp.f32 %v1986_v60 }
 0x3d1   : > { %2269 = vmatprep.mubr.f32.mxu0 %v2073_v28 }
 0x3d2   : > { %v3656_v24 = vpop.eup %3655  ;;  %2270 = vmatmul.mubr.f32.gmra.mrb[88].mxu0 %v2072_v7 }
 0x3d3   : > { %v1989_v10 = vpop.xlane.xlu1 %1988  ;;  %v2076_v49 = vmul.f32 %v3656_v24, %v4786_v63  ;;  %v2075_v62 = vmul.f32 %v3656_v24, %v4784_v59 }
 0x3d4   : > { %3661 = vrcp.f32 %v1989_v10 }
 0x3d5   : > { %2274 = vmatprep.mubr.f32.mxu0 %v2076_v49 }
 0x3d6   : > { %v3658_v39 = vpop.eup %3657  ;;  %2275 = vmatmul.mubr.f32.gmra.mrb[90].mxu0 %v2075_v62 }
 0x3d7   : > { %v1992_v8 = vpop.xlane.xlu0 %1991  ;;  %v2079_v43 = vmul.f32 %v3658_v39, %v4794_v25  ;;  %v2078_v0 = vmul.f32 %v3658_v39, %v4792_v20 }
 0x3d8   : > { %3663 = vrcp.f32 %v1992_v8 }
 0x3d9   : > { %2279 = vmatprep.mubr.f32.mxu0 %v2079_v43 }
 0x3da   : > { %v3660_v1 = vpop.eup %3659  ;;  %2280 = vmatmul.mubr.f32.gmra.mrb[92].mxu0 %v2078_v0 }
 0x3db   : > { %v1995_v54 = vpop.xlane.xlu1 %1994  ;;  %v2082_v57 = vmul.f32 %v3660_v1, %v4802_v14  ;;  %v2081_v63 = vmul.f32 %v3660_v1, %v4800_v34 }
 0x3dc   : > { %3665 = vrcp.f32 %v1995_v54 }
 0x3dd   : > { %2284 = vmatprep.mubr.f32.mxu0 %v2082_v57 }
 0x3de   : > { %v3662_v59 = vpop.eup %3661  ;;  %2285 = vmatmul.mubr.f32.gmra.mrb[94].mxu0 %v2081_v63 }
 0x3df   : > { %v1998_v12 = vpop.xlane.xlu0 %1997  ;;  %v2085_v35 = vmul.f32 %v3662_v59, %v5190_v58  ;;  %v2084_v25 = vmul.f32 %v3662_v59, %v5191_v29 }
 0x3e0   : > { %3667 = vrcp.f32 %v1998_v12 }
 0x3e1   : > { %2289 = vmatprep.mubr.f32.mxu0 %v2085_v35 }
 0x3e2   : > { %v3664_v20 = vpop.eup %3663  ;;  %2290 = vmatmul.mubr.f32.gmra.mrb[96].mxu0 %v2084_v25 }
 0x3e3   : > { %v2001_v11 = vpop.xlane.xlu1 %2000  ;;  %v2088_v38 = vmul.f32 %v3664_v20, %v5192_v56  ;;  %v2087_v14 = vmul.f32 %v3664_v20, %v5193_v47 }
 0x3e4   : > { %3669 = vrcp.f32 %v2001_v11 }
 0x3e5   : > { %2294 = vmatprep.mubr.f32.mxu0 %v2088_v38 }
 0x3e6   : > { %v3666_v34 = vpop.eup %3665  ;;  %2295 = vmatmul.mubr.f32.gmra.mrb[98].mxu0 %v2087_v14 }
 0x3e7   : > { %v2004_v37 = vpop.xlane.xlu0 %2003  ;;  %v2091_v6 = vmul.f32 %v3666_v34, %v5194_v23  ;;  %v2090_v40 = vmul.f32 %v3666_v34, %v5195_v18 }
 0x3e8   : > { %3671 = vrcp.f32 %v2004_v37 }
 0x3e9   : > { %2299 = vmatprep.mubr.f32.mxu0 %v2091_v6 }
 0x3ea   : > { %v3668_v31 = vpop.eup %3667  ;;  %2300 = vmatmul.mubr.f32.gmra.mrb[100].mxu0 %v2090_v40 }
 0x3eb   : > { %v2007_v42 = vpop.xlane.xlu1 %2006  ;;  %v2094_v33 = vmul.f32 %v3668_v31, %v4834_v19  ;;  %v2093_v50 = vmul.f32 %v3668_v31, %v4832_v16 }
 0x3ec   : > { %3673 = vrcp.f32 %v2007_v42 }
 0x3ed   : > { %2304 = vmatprep.mubr.f32.mxu0 %v2094_v33 }
 0x3ee   : > { %v3670_v13 = vpop.eup %3669  ;;  %2305 = vmatmul.mubr.f32.gmra.mrb[102].mxu0 %v2093_v50 }
 0x3ef   : > { %v2010_v36 = vpop.xlane.xlu0 %2009  ;;  %v2097_v5 = vmul.f32 %v3670_v13, %v4842_v51  ;;  %v2096_v9 = vmul.f32 %v3670_v13, %v4840_v53 }
 0x3f0   : > { %3675 = vrcp.f32 %v2010_v36 }
 0x3f1   : > { %2309 = vmatprep.mubr.f32.mxu0 %v2097_v5 }
 0x3f2   : > { %v3672_v32 = vpop.eup %3671  ;;  %2310 = vmatmul.mubr.f32.gmra.mrb[104].mxu0 %v2096_v9 }
 0x3f3   : > { %v2013_v61 = vpop.xlane.xlu1 %2012  ;;  %v2100_v3 = vmul.f32 %v3672_v32, %v4850_v27  ;;  %v2099_v19 = vmul.f32 %v3672_v32, %v4848_v41 }
 0x3f4   : > { %3677 = vrcp.f32 %v2013_v61 }
 0x3f5   : > { %2314 = vmatprep.mubr.f32.mxu0 %v2100_v3 }
 0x3f6   : > { %v3674_v16 = vpop.eup %3673  ;;  %2315 = vmatmul.mubr.f32.gmra.mrb[106].mxu0 %v2099_v19 }
 0x3f7   : > { %v2103_v48 = vmul.f32 %v3674_v16, %v5196_v15  ;;  %v2102_v51 = vmul.f32 %v3674_v16, %v5197_v4 }
 0x3f9   : > { %2319 = vmatprep.mubr.f32.mxu0 %v2103_v48 }
 0x3fa   : > { %v3676_v53 = vpop.eup %3675  ;;  %2320 = vmatmul.mubr.f32.gmra.mrb[108].mxu0 %v2102_v51 }
 0x3fb   : > { %v2106_v21 = vmul.f32 %v3676_v53, %v5198_v52  ;;  %v2105_v46 = vmul.f32 %v3676_v53, %v5199_v22 }
 0x3fd   : > { %2324 = vmatprep.mubr.f32.mxu0 %v2106_v21 }
 0x3fe   : > { %v3678_v27 = vpop.eup %3677  ;;  %2325 = vmatmul.mubr.f32.gmra.mrb[110].mxu0 %v2105_v46 }
 0x3ff   : > { %v2109_v41 = vmul.f32 %v3678_v27, %v4868_v2  ;;  %v2108_v26 = vmul.f32 %v3678_v27, %v5200_v30 }
 0x401   : > { %2329 = vmatprep.mubr.f32.mxu0 %v2109_v41 }
 0x402   : > { %2330 = vmatmul.mubr.f32.gmra.mrb[112].mxu0 %v2108_v26 }
 0x459   : > { %v2176_v45 = vpop.f32.mrb[50].mxu0 }
 0x45a   : > { %v2178_v17 = vpop.f32.mrb[51].mxu0 }
 0x45d   : > { %v2181_v55 = vpop.f32.mrb[52].mxu0 }
 0x45e   : > { %v3365_v60 = vpack.c.bf16 %v2181_v55, %v2176_v45  ;;  %v2183_v28 = vpop.f32.mrb[53].mxu0 }
 0x461   : > { %v2186_v7 = vpop.f32.mrb[54].mxu0 }
 0x462   : > { %v2188_v2 = vpop.f32.mrb[55].mxu0 }
 0x465   : > { %v2191_v24 = vpop.f32.mrb[56].mxu0 }
 0x466   : > { %v3371_v10 = vpack.c.bf16 %v2191_v24, %v2186_v7  ;;  %v2193_v49 = vpop.f32.mrb[57].mxu0 }
 0x469   : > { %v2196_v62 = vpop.f32.mrb[58].mxu0 }
 0x46a   : > { %v2198_v39 = vpop.f32.mrb[59].mxu0 }
 0x46d   : > { %v2201_v8 = vpop.f32.mrb[60].mxu0 }
 0x46e   : > { %v3377_v43 = vpack.c.bf16 %v2201_v8, %v2196_v62  ;;  %v2203_v0 = vpop.f32.mrb[61].mxu0 }
 0x471   : > { %v2206_v1 = vpop.f32.mrb[62].mxu0 }
 0x472   : > { %v2208_v54 = vpop.f32.mrb[63].mxu0 }
 0x475   : > { %v2211_v57 = vpop.f32.mrb[64].mxu0 }
 0x476   : > { %v3383_v63 = vpack.c.bf16 %v2211_v57, %v2206_v1  ;;  %v2213_v59 = vpop.f32.mrb[65].mxu0 }
 0x479   : > { %v2216_v12 = vpop.f32.mrb[66].mxu0 }
 0x47a   : > { %v2218_v58 = vpop.f32.mrb[67].mxu0 }
 0x47d   : > { %v2221_v35 = vpop.f32.mrb[68].mxu0 }
 0x47e   : > { %v3389_v29 = vpack.c.bf16 %v2221_v35, %v2216_v12  ;;  %v2223_v25 = vpop.f32.mrb[69].mxu0  ;;  %v3777_v12 = vmov (!%p2878_p0), 0.0  }
 0x47f   : > { %2509 = vst [vmem:[#allocation2] sm:$0xff] (!%p2878_p0), %v3777_v12 }
 0x481   : > { %v2226_v20 = vpop.f32.mrb[70].mxu0 }
 0x482   : > { %v2228_v11 = vpop.f32.mrb[71].mxu0 }
 0x485   : > { %v2231_v56 = vpop.f32.mrb[72].mxu0 }
 0x486   : > { %v3395_v38 = vpack.c.bf16 %v2231_v56, %v2226_v20  ;;  %v2233_v47 = vpop.f32.mrb[73].mxu0 }
 0x489   : > { %v2236_v14 = vpop.f32.mrb[74].mxu0 }
 0x48a   : > { %v2238_v34 = vpop.f32.mrb[75].mxu0 }
 0x48d   : > { %v2241_v37 = vpop.f32.mrb[76].mxu0 }
 0x48e   : > { %v3401_v23 = vpack.c.bf16 %v2241_v37, %v2236_v14  ;;  %v2243_v6 = vpop.f32.mrb[77].mxu0 }
 0x491   : > { %v2246_v18 = vpop.f32.mrb[78].mxu0 }
 0x492   : > { %v2248_v40 = vpop.f32.mrb[79].mxu0 }
 0x495   : > { %v2251_v31 = vpop.f32.mrb[80].mxu0 }
 0x496   : > { %v3407_v42 = vpack.c.bf16 %v2251_v31, %v2246_v18  ;;  %v2253_v33 = vpop.f32.mrb[81].mxu0 }
 0x499   : > { %v2256_v50 = vpop.f32.mrb[82].mxu0 }
 0x49a   : > { %v2258_v13 = vpop.f32.mrb[83].mxu0 }
 0x49d   : > { %v2261_v36 = vpop.f32.mrb[84].mxu0 }
 0x49e   : > { %v3362_v5 = vpack.c.bf16 %v2261_v36, %v2256_v50  ;;  %v2263_v9 = vpop.f32.mrb[85].mxu0 }
 0x4a0   : > { %3364 = vmatprep.subr.msk.bf16.mxu1 %vm4209_vm3, %v3362_v5 }
 0x4a1   : > { %v2266_v61 = vpop.f32.mrb[86].mxu0  ;;  %3367 = vmatpush3.bf16.xpose.msk.msra.mxu1 %vm4209_vm3, %v3365_v60 }
 0x4a2   : > { %v2268_v3 = vpop.f32.mrb[87].mxu0 }
 0x4a5   : > { %v2271_v19 = vpop.f32.mrb[88].mxu0 }
 0x4a6   : > { %v3368_v16 = vpack.c.bf16 %v2271_v19, %v2266_v61  ;;  %v2273_v15 = vpop.f32.mrb[89].mxu0 }
 0x4a8   : > { %3370 = vmatprep.subr.msk.bf16.mxu1 %vm4209_vm3, %v3368_v16 }
 0x4a9   : > { %v2276_v48 = vpop.f32.mrb[90].mxu0  ;;  %3373 = vmatpush3.bf16.xpose.msk.msra.mxu1 %vm4209_vm3, %v3371_v10 }
 0x4aa   : > { %v2278_v4 = vpop.f32.mrb[91].mxu0 }
 0x4ad   : > { %v2281_v51 = vpop.f32.mrb[92].mxu0 }
 0x4ae   : > { %v3374_v53 = vpack.c.bf16 %v2281_v51, %v2276_v48  ;;  %v2283_v52 = vpop.f32.mrb[93].mxu0 }
 0x4b0   : > { %3376 = vmatprep.subr.msk.bf16.mxu1 %vm4209_vm3, %v3374_v53 }
 0x4b1   : > { %v2286_v21 = vpop.f32.mrb[94].mxu0  ;;  %3379 = vmatpush3.bf16.xpose.msk.msra.mxu1 %vm4209_vm3, %v3377_v43 }
 0x4b2   : > { %v2288_v22 = vpop.f32.mrb[95].mxu0 }
 0x4b5   : > { %v2291_v46 = vpop.f32.mrb[96].mxu0 }
 0x4b6   : > { %v3380_v27 = vpack.c.bf16 %v2291_v46, %v2286_v21  ;;  %v2293_v41 = vpop.f32.mrb[97].mxu0 }
 0x4b8   : > { %3382 = vmatprep.subr.msk.bf16.mxu1 %vm4209_vm3, %v3380_v27 }
 0x4b9   : > { %v2296_v30 = vpop.f32.mrb[98].mxu0  ;;  %3385 = vmatpush3.bf16.xpose.msk.msra.mxu1 %vm4209_vm3, %v3383_v63 }
 0x4ba   : > { %v2298_v26 = vpop.f32.mrb[99].mxu0 }
 0x4bd   : > { %v2301_v45 = vpop.f32.mrb[100].mxu0 }
 0x4be   : > { %v3386_v17 = vpack.c.bf16 %v2301_v45, %v2296_v30  ;;  %v2303_v55 = vpop.f32.mrb[101].mxu0 }
 0x4c0   : > { %3388 = vmatprep.subr.msk.bf16.mxu1 %vm4209_vm3, %v3386_v17 }
 0x4c1   : > { %v2306_v60 = vpop.f32.mrb[102].mxu0  ;;  %3391 = vmatpush3.bf16.xpose.msk.msra.mxu1 %vm4209_vm3, %v3389_v29 }
 0x4c2   : > { %v2308_v28 = vpop.f32.mrb[103].mxu0 }
 0x4c5   : > { %v2311_v7 = vpop.f32.mrb[104].mxu0 }
 0x4c6   : > { %v3392_v2 = vpack.c.bf16 %v2311_v7, %v2306_v60  ;;  %v2313_v24 = vpop.f32.mrb[105].mxu0 }
 0x4c8   : > { %3394 = vmatprep.subr.msk.bf16.mxu1 %vm4209_vm3, %v3392_v2 }
 0x4c9   : > { %v2316_v10 = vpop.f32.mrb[106].mxu0  ;;  %3397 = vmatpush3.bf16.xpose.msk.msra.mxu1 %vm4209_vm3, %v3395_v38 }
 0x4ca   : > { %v2318_v49 = vpop.f32.mrb[107].mxu0 }
 0x4cd   : > { %v2321_v62 = vpop.f32.mrb[108].mxu0 }
 0x4ce   : > { %v3398_v39 = vpack.c.bf16 %v2321_v62, %v2316_v10  ;;  %v2323_v8 = vpop.f32.mrb[109].mxu0 }
 0x4d0   : > { %3400 = vmatprep.subr.msk.bf16.mxu1 %vm4209_vm3, %v3398_v39 }
 0x4d1   : > { %v2326_v43 = vpop.f32.mrb[110].mxu0  ;;  %3403 = vmatpush3.bf16.xpose.msk.msra.mxu1 %vm4209_vm3, %v3401_v23 }
 0x4d2   : > { %v2328_v0 = vpop.f32.mrb[111].mxu0 }
 0x4d5   : > { %v2331_v1 = vpop.f32.mrb[112].mxu0 }
 0x4d6   : > { %v3404_v54 = vpack.c.bf16 %v2331_v1, %v2326_v43  ;;  %v2333_v57 = vpop.f32.mrb[113].mxu0 }
 0x4d8   : > { %3406 = vmatprep.subr.msk.bf16.mxu1 %vm4209_vm3, %v3404_v54 }
 0x4d9   : > { %3409 = vmatpush3.bf16.xpose.msk.msra.mxu1 %vm4209_vm3, %v3407_v42 }
 0x4e0   : > { %3115 = vmatmul.mubr.msk.f32.vlgmr.msra.gmra.mrb[110].mxu1 %vm1180_vm2, %v4940_v44 }
 0x5ae   : > { %2508 = sbr.rel (%p2878_p0) target bundleno = 1461 (0x5b5), region = 48 }
 0x5b3   : > { %v2500_v63 = vpop.f32.mrb[110].mxu1 }
 0x5b4   : > { %v2502_v59 = vpop.f32.mrb[111].mxu1 }
 0x5b5 PF: > { %v2510_v58 = vld [vmem:[#allocation2] sm:$0xff]  ;;  %v2513_v35 = vcombine.low %v2500_v63, %v2502_v59  ;;  %p2879_p1 = scmp.ne.s32.totalorder %s3758_s24, 3 }
 0x5b6   : > { %v2522_v44 = vld [vmem:[%s5046_s5] sm:$0xf] (!%p2879_p1)  ;;  %v3778_v25 = vmov (!%p2879_p1), 0   ;;  %v3779_v20 = vmov (!%p2879_p1), 839922192   ;;  %v2530_v56 = vlaneseq (!%p2879_p1) }
 0x5b7   : > { %v2515_v29 = vadd.f32 %v2513_v35, %v2510_v58  ;;  %2520 = sbr.rel (%p2879_p1) target bundleno = 1597 (0x63d), region = 52  ;;  %3679 = vset.pattern.permute.xlu0 (!%p2879_p1), %v3778_v25  ;;  %v2528_v11 = vunpack.c.l.s4 (!%p2879_p1), %v3779_v20 }
 0x5b8   : > { %2525 = vperm.xlu0 (!%p2879_p1), %3679, %v2522_v44   ;;  %v2531_v47 = vshrl.u32 (!%p2879_p1), %v2530_v56, 7 }
 0x5b9   : > { %2516 = vst [vmem:[#allocation2] sm:$0xff] %v2515_v29  ;;  %v2529_v38 = vunpack.c.0.s8 (!%p2879_p1), %v2528_v11 }
 0x5bb   : > { %v2532_v14 = vsub.s32 (!%p2879_p1), %v2529_v38, %v2531_v47 }
 0x5c0   : > { %v2521_v37 = vld [vmem:[#allocation2] sm:$0xff] }
 0x637   : > { %v2526_v34 = vpop.permute.xlu0 %2525 }
 0x638   : > { %v2533_v23 = vrot.slane %v2526_v34, %v2532_v14 }
 0x63a   : > { %v2535_v6 = vadd.f32 %v2533_v23, %v2521_v37 }
 0x63c   : > { %2536 = vst [vmem:[%s308_s17] sm:$0xff] %v2535_v6 }
 0x63d PF: > { %s2886_s24 = sshll.u32 %s3762_s25, 7  ;;  %s2552_s29 = sshll.u32 %s308_s17, 4  ;;  %s2553_s29 = int_to_ptr.vmem [resolvable:$true] %s2552_s29 }
 0x63e   : > { %s4990_s20 = scalar_lea.hbm %s5047_s6, %s2886_s24  ;;  %s2538_s30 = scalar_lea.sflag [#allocation4], %s306_s14 }
 0x63f   : > { %s3680_s11 = scalar_lea.vmem %s2553_s29, 128  ;;  %s3780_s12 = smov [#allocation3]  }
 0x640   : > { %p3681_p2 = scmp.ne.s32.totalorder %s2553_s29, %s3680_s11  ;;  %s3684_s15 = sshll.u32 %s3780_s12, 4  ;;  %s3685_s15 = int_to_ptr.vmem [resolvable:$false] %s3684_s15 }
 0x641   : > { %s3686_s16 = scalar_lea.vmem %s3685_s15, 256  ;;  %p3687_p6 = scmp.lt.s32.totalorder %s2553_s29, %s3685_s15 }
 0x642   : > { %p3682_p4 = pnand %p3681_p2, %p3865_p3  ;;  %p3688_p7 = scmp.lt.s32.totalorder %s3686_s16, %s3680_s11 }
 0x644   : > { %p3683_p5 = pneg %p3682_p4  ;;  %p3689_p8 = por %p3688_p7, %p3687_p6 }
 0x646   : > { %p3690_p10 = pnand %p3689_p8, %p3683_p5 }
 0x648   : > { %3693 = shalt.err (!%p3690_p10)
}
 0x649   : > { %s3694_s25 = scalar_lea.hbm %s4990_s20, 128  ;;  %s3698_s17 = scalar_lea.hbm %s5047_s6, 256 }
 0x64a   : > { %p3695_p11 = scmp.ne.s32.totalorder %s4990_s20, %s3694_s25  ;;  %p3699_p0 = scmp.lt.u32.totalorder %s4990_s20, %s5047_s6 }
 0x64b   : > { %p3700_p1 = scmp.lt.u32.totalorder %s3698_s17, %s3694_s25  ;;  %p3702_p4 = scmp.lt.u32.totalorder %s3694_s25, %s4990_s20 }
 0x64c   : > { %p3696_p12 = pnand %p3695_p11, %p3865_p3 }
 0x64d   : > { %p3701_p2 = por %p3700_p1, %p3699_p0 }
 0x64e   : > { %p3697_p13 = pneg %p3696_p12 }
 0x64f   : > { %p3703_p5 = por %p3702_p4, %p3701_p2 }
 0x651   : > { %p3704_p6 = pnand %p3703_p5, %p3697_p13 }
 0x653   : > { %3707 = shalt.err (!%p3704_p6)
}
 0x654   : > { %3412 = dma.vmem_to_hbm [thread:$0]  (%p3865_p3), %s2553_s29, 128, %s4990_s20, %s2538_s30  }
 0x655 PF: > { %p3418_p7 = scmp.ge.s32.totalorder %s3774_s28, 2  ;;  %s2564_s8 = sand.u32 1, %s3746_s21  }
 0x656   : > { %s2565_s11 = scalar_lea.sflag [#allocation4], %s2564_s8 }
 0x657   : > { %p3415_p8 = pnand %p3418_p7, %p3875_p9 }
 0x659   : > { %3741 = dma.done.wait (!%p3415_p8), %s2565_s11, 128  }
 0x65a   : > { %3743 = vsyncadd (!%p3415_p8), %s2565_s11, 4294967168  ;;  %s19_s28 = sadd.s32 1, %s3774_s28   ;;  %s5202_s9 = sld [smem:[#allocation6_spill]] }
 0x65b   : > { %p16_p10 = scmp.ge.s32.totalorder %s19_s28, 10   ;;  %s5203_s21 = smov %s3750_s22 }
 0x65c   : > { %s5204_s22 = smov %s3754_s23  ;;  %s5205_s23 = smov %s3883_s13 }
 0x65d   : > { %s5206_s24 = smov %s3766_s26  ;;  %s5207_s25 = smov %s3770_s27 }
 0x65e   : > { %s5208_s26 = smov %s5211_s7  ;;  %18 = sbr.rel (!%p16_p10) target bundleno = 5 (0x5), region = 99 }
 0x660   : > { %s5209_s27 = smov %s5202_s9 }
 0x665   :  { %2570 = vsyncpa [#allocation4], 1 }
 0x666   :  { %2572 = vsyncpa [#allocation4 + $0x1], 1 }

</bundles_post_ra>
